<compile_context>
chip_gen: v6e
topology: v6e:2x2x1
jax: 0.10.0
libtpu: 0.0.40
codegen_flags: <defaults>
</compile_context>

<pallas_src>
import functools

import jax
import jax.numpy as jnp
import numpy as np
from jax import lax
from jax.experimental import pallas as pl
from jax.experimental.pallas import tpu as pltpu

# ----------------------- model hyper-parameters (small) -----------------------
B = 2            # batch
S = 8            # sequence length (subword tokens)
CHAR_LEN = 12    # max characters per token
CHAR_VOCAB = 64
CHAR_EMB = 16    # char_emb_dim (module default is 64; small here)
D_MODEL = 32     # base_model_hidden_size
RATIO = 0.25
CHAR_OUT = int(D_MODEL * RATIO)          # char_cnn_output_dim = 8
KERNEL_SIZES = (3, 4, 5)                 # CharCNN.CHAR_CNN_KERNEL_SIZES (assumed)
NUM_FILTERS = 16                         # CharCNN.CHAR_CNN_NUM_FILTERS_PER_KERNEL
SUM_FILTERS = NUM_FILTERS * len(KERNEL_SIZES)        # 48
VOCAB = 100                              # subword vocab (toy)
CHAR_PAD_IDX = 0

N_TOKENS = B * S
LK_LIST = tuple(CHAR_LEN - k + 1 for k in KERNEL_SIZES)      # (10, 9, 8)
LK_MAX = max(LK_LIST)                                        # 10


def _round_up(x, m):
    return (x + m - 1) // m * m


K_OH = CHAR_LEN * CHAR_VOCAB                                 # 768 one-hot lanes
C_COLS = _round_up(LK_MAX * SUM_FILTERS, 128)                # 480 -> 512 (lane-dense)
D_OUT = _round_up(D_MODEL, 128)                              # 32 -> 128 (lane-dense store)

# ----------------------------- tiling knobs -----------------------------------
_RM_MAX = 256     # rows per inner compute chunk (fills MXU M; conv slab 512 KiB f32)
_TM_MAX = 4096    # rows per grid step (amortizes ~0.35us/step; fits default VMEM)


def _pick_tiles(n):
    """Returns (inner chunk rows rm, grid-step rows tm, padded row count n_pad)."""
    rm = min(_RM_MAX, _round_up(max(n, 1), 16))      # 16-aligned (bf16 sublane packing)
    n_chunks = _round_up(n, rm) // rm
    cps = min(max(1, _TM_MAX // rm), n_chunks)       # chunks per grid step
    n_steps = _round_up(n_chunks, cps) // cps
    if n_chunks >= 2 and n_steps % 2:                # even step count -> both v7x TCs busy
        n_steps += 1
        cps = _round_up(n_chunks, n_steps) // n_steps
        n_steps = _round_up(n_chunks, cps) // cps
        if n_steps % 2:
            n_steps += 1                             # pad one step of zero rows if ragged
    tm = cps * rm
    return rm, tm, n_steps * tm


# ------------------------------- Pallas kernel --------------------------------
def _char_aware_kernel(ids_ref, sub_ref, wconv_ref, bconv_ref,
                       wpsub_ref, wpchar_ref, bproj_ref, out_ref, *, rm, n_chunks):
    """One grid step processes n_chunks chunks of rm tokens each.

    Per chunk:
      oh     = one-hot(position, char-id)                  (rm, 768) bf16
      conv   = relu(oh @ W_tab + b_conv)                   one MXU push, N=512
      pooled = max over 10 contiguous 48-wide slices       (rm, 48)
      out    = sub @ Wp_sub + pooled @ Wp_char + b_proj    two bf16 dots, no concat
    """
    # loop-invariant hoists (JAX does not CSE broadcast_in_dim -> do them once)
    wconv = wconv_ref[...]                                       # (K_OH, C_COLS) bf16
    wpsub = wpsub_ref[...]                                       # (D_MODEL, D_OUT) bf16
    wpchar = wpchar_ref[...]                                     # (SUM_FILTERS, D_OUT) bf16
    bconv = jnp.broadcast_to(bconv_ref[...], (rm, C_COLS))       # (rm, C_COLS) f32
    bproj = jnp.broadcast_to(bproj_ref[...], (rm, D_OUT))        # (rm, D_OUT) f32
    lanes = lax.broadcasted_iota(jnp.int32, (rm, K_OH), 1)       # (rm, K_OH) int32

    def chunk_body(c, carry):
        r0 = pl.multiple_of(c * rm, rm)
        ids = ids_ref[pl.ds(r0, rm), :]                          # (rm, CHAR_LEN) int32

        # fused char-embedding gather: one-hot over (position, char-id) lanes.
        hot = lanes == ids[:, 0:1]
        for pos in range(1, CHAR_LEN):
            hot = jnp.logical_or(hot, lanes == (ids[:, pos:pos + 1] + pos * CHAR_VOCAB))
        oh = hot.astype(jnp.bfloat16)                            # (rm, K_OH) bf16

        # gather + all-width Toeplitz conv in one bf16 MXU push, then bias + ReLU.
        conv = jnp.dot(oh, wconv, preferred_element_type=jnp.float32)
        conv = jnp.maximum(conv + bconv, 0.0)                    # (rm, C_COLS) f32

        # max-over-time: columns are [position][filter]; padded positions have
        # zero weight AND zero bias, so their post-ReLU 0 never wins the max.
        pooled = conv[:, 0:SUM_FILTERS]
        for l in range(1, LK_MAX):
            pooled = jnp.maximum(pooled, conv[:, l * SUM_FILTERS:(l + 1) * SUM_FILTERS])
        # pooled: (rm, SUM_FILTERS) f32, contiguous

        # split projection (CharCNN output linear folded in on the host side).
        sub = sub_ref[pl.ds(r0, rm), :]                          # (rm, D_MODEL) bf16
        out = (jnp.dot(sub, wpsub, preferred_element_type=jnp.float32)
               + jnp.dot(pooled.astype(jnp.bfloat16), wpchar,
                         preferred_element_type=jnp.float32)
               + bproj)
        out_ref[pl.ds(r0, rm), :] = out                          # lane-dense f32 store
        return carry

    unroll = 2 if (n_chunks > 1 and n_chunks % 2 == 0) else 1
    lax.fori_loop(0, n_chunks, chunk_body, 0, unroll=unroll)


# ------------------------------- host wrapper ----------------------------------
def char_aware_forward(char_ids, sub_emb, packed):
    """char_ids: [N, CHAR_LEN] int32, sub_emb: [N, D_MODEL] bf16
       -> inputs_embeds [N, D_MODEL] f32."""
    n = char_ids.shape[0]
    rm, tm, n_pad = _pick_tiles(n)
    if n_pad != n:                       # never silently drop a ragged tail
        char_ids = jnp.pad(char_ids, ((0, n_pad - n), (0, 0)))
        sub_emb = jnp.pad(sub_emb, ((0, n_pad - n), (0, 0)))

    grid = (n_pad // tm,)
    kernel = functools.partial(_char_aware_kernel, rm=rm, n_chunks=tm // rm)

    def _full(arr):                      # loop-invariant full-block weight spec
        return pl.BlockSpec(arr.shape, lambda i: (0, 0))

    flops = 2 * n_pad * (K_OH * C_COLS + D_MODEL * D_OUT + SUM_FILTERS * D_OUT)
    bytes_accessed = (n_pad * (4 * CHAR_LEN + 2 * D_MODEL + 4 * D_OUT)
                      + 2 * packed['wconv'].size + 4 * packed['bconv'].size
                      + 2 * (packed['wproj_sub'].size + packed['wproj_char'].size)
                      + 4 * packed['bproj'].size)

    out = pl.pallas_call(
        kernel,
        out_shape=jax.ShapeDtypeStruct((n_pad, D_OUT), jnp.float32),
        grid_spec=pltpu.PrefetchScalarGridSpec(
            num_scalar_prefetch=0,
            grid=grid,
            in_specs=[
                pl.BlockSpec((tm, CHAR_LEN), lambda i: (i, 0)),   # char ids (int32)
                pl.BlockSpec((tm, D_MODEL), lambda i: (i, 0)),    # subword emb (bf16)
                _full(packed['wconv']),
                _full(packed['bconv']),
                _full(packed['wproj_sub']),
                _full(packed['wproj_char']),
                _full(packed['bproj']),
            ],
            out_specs=pl.BlockSpec((tm, D_OUT), lambda i: (i, 0)),
        ),
        compiler_params=pltpu.CompilerParams(dimension_semantics=("parallel",)),
        cost_estimate=pl.CostEstimate(flops=flops, transcendentals=0,
                                      bytes_accessed=bytes_accessed),
    )(char_ids, sub_emb, packed['wconv'], packed['bconv'],
      packed['wproj_sub'], packed['wproj_char'], packed['bproj'])
    return out[:n, :D_MODEL]


# -------------------------- host-side parameter packing ------------------------
def build_packed_params(raw, char_table):
    """Fold the CharCNN into matmul-friendly operands.

    wconv/bconv    : merged (gather + Toeplitz conv) weight (K_OH, C_COLS) / bias.
                     Rows indexed by (char position, char id) - the char embedding
                     table (padding_idx row already zeroed) is folded in, so the
                     in-kernel one-hot matmul performs gather + all conv widths.
                     Columns laid out [position l][filter f]; positions past a
                     width's valid range (and the pad to 512) get zero weight AND
                     zero bias so post-ReLU they are exactly 0.
    wproj_sub/char : projection Linear split into subword / char blocks with the
                     CharCNN output linear folded in, padded to D_OUT lanes:
                     proj([sub | cat@Wcl + bcl]) = sub@Wps + cat@(Wcl@Wpc) + (bcl@Wpc + bp)
    """
    # Toeplitz conv weight over the flattened char embedding, [position][filter] cols
    wconv_emb = np.zeros((CHAR_LEN * CHAR_EMB, C_COLS), np.float32)
    bconv = np.zeros((1, C_COLS), np.float32)
    foff = 0
    for k in KERNEL_SIZES:
        w = np.asarray(raw[f'w{k}'], np.float32)        # (k, CHAR_EMB, NUM_FILTERS)
        b = np.asarray(raw[f'b{k}'], np.float32)        # (1, NUM_FILTERS)
        lk = CHAR_LEN - k + 1
        for l in range(lk):
            c0 = l * SUM_FILTERS + foff
            for j in range(k):
                r0 = (l + j) * CHAR_EMB
                wconv_emb[r0:r0 + CHAR_EMB, c0:c0 + NUM_FILTERS] = w[j]
            bconv[0, c0:c0 + NUM_FILTERS] = b[0]
        foff += NUM_FILTERS

    # fold the char embedding table -> rows become (position, char id)
    tab = np.asarray(char_table, np.float32)            # (CHAR_VOCAB, CHAR_EMB)
    wconv_tab = np.zeros((K_OH, C_COLS), np.float32)
    for pos in range(CHAR_LEN):
        wconv_tab[pos * CHAR_VOCAB:(pos + 1) * CHAR_VOCAB, :] = (
            tab @ wconv_emb[pos * CHAR_EMB:(pos + 1) * CHAR_EMB, :])

    wcl = np.asarray(raw['wcl'], np.float32)
    bcl = np.asarray(raw['bcl'], np.float32)
    wps = np.asarray(raw['wps'], np.float32)
    wpc = np.asarray(raw['wpc'], np.float32)
    bp = np.asarray(raw['bp'], np.float32)

    wproj_sub = np.zeros((D_MODEL, D_OUT), np.float32)
    wproj_sub[:, :D_MODEL] = wps
    wproj_char = np.zeros((SUM_FILTERS, D_OUT), np.float32)
    wproj_char[:, :D_MODEL] = wcl @ wpc
    bproj = np.zeros((1, D_OUT), np.float32)
    bproj[0, :D_MODEL] = (bcl @ wpc + bp)[0]

    return {
        'wconv': jnp.asarray(wconv_tab, jnp.bfloat16),   # bf16 MXU operands
        'bconv': jnp.asarray(bconv, jnp.float32),
        'wproj_sub': jnp.asarray(wproj_sub, jnp.bfloat16),
        'wproj_char': jnp.asarray(wproj_char, jnp.bfloat16),
        'bproj': jnp.asarray(bproj, jnp.float32),
    }


# ------------------------------ reference (jnp) --------------------------------
def reference_forward(char_ids, sub_f32, char_table, raw):
    """Plain-jnp f32 reference of the module forward (gather -> CharCNN ->
    concat -> projection)."""
    n = char_ids.shape[0]
    ce = jnp.take(char_table, char_ids.reshape(-1), axis=0).reshape(n, CHAR_LEN, CHAR_EMB)
    feats = []
    for k in KERNEL_SIZES:
        w = raw[f'w{k}']
        b = raw[f'b{k}']
        lk = CHAR_LEN - k + 1
        acc = jnp.zeros((n, lk, NUM_FILTERS), jnp.float32)
        for j in range(k):
            acc = acc + jnp.einsum('tle,ef->tlf', ce[:, j:j + lk, :], w[j])
        acc = jnp.maximum(acc + b[0][None, None, :], 0.0)
        feats.append(jnp.max(acc, axis=1))
    cat = jnp.concatenate(feats, axis=-1)
    char_out = cat @ raw['wcl'] + raw['bcl'][0]
    return sub_f32 @ raw['wps'] + char_out @ raw['wpc'] + raw['bp'][0]


# ----------------------------------- main --------------------------------------
if __name__ == "__main__":
    key = jax.random.PRNGKey(0)
    keys = jax.random.split(key, 16)

    # deterministic parameter init (shapes follow the PyTorch module's __init__)
    emb_table = jax.random.normal(keys[0], (VOCAB, D_MODEL), jnp.float32) * 0.02
    char_table = jax.random.normal(keys[1], (CHAR_VOCAB, CHAR_EMB), jnp.float32) * 0.02
    char_table = char_table.at[CHAR_PAD_IDX].set(0.0)   # padding_idx behaviour

    raw = {
        # Conv1d weights stored as [kernel_size, in_channels(CHAR_EMB), out_channels]
        'w3': jax.random.normal(keys[2], (3, CHAR_EMB, NUM_FILTERS), jnp.float32) * 0.1,
        'b3': jax.random.normal(keys[3], (1, NUM_FILTERS), jnp.float32) * 0.01,
        'w4': jax.random.normal(keys[4], (4, CHAR_EMB, NUM_FILTERS), jnp.float32) * 0.1,
        'b4': jax.random.normal(keys[5], (1, NUM_FILTERS), jnp.float32) * 0.01,
        'w5': jax.random.normal(keys[6], (5, CHAR_EMB, NUM_FILTERS), jnp.float32) * 0.1,
        'b5': jax.random.normal(keys[7], (1, NUM_FILTERS), jnp.float32) * 0.01,
        # CharCNN output linear: (sum_filters -> char_cnn_output_dim)
        'wcl': jax.random.normal(keys[8], (SUM_FILTERS, CHAR_OUT), jnp.float32) * 0.1,
        'bcl': jax.random.normal(keys[9], (1, CHAR_OUT), jnp.float32) * 0.01,
        # projection Linear(D_MODEL + CHAR_OUT -> D_MODEL), split into two blocks
        'wps': jax.random.normal(keys[10], (D_MODEL, D_MODEL), jnp.float32) * 0.1,
        'wpc': jax.random.normal(keys[11], (CHAR_OUT, D_MODEL), jnp.float32) * 0.1,
        'bp':  jax.random.normal(keys[12], (1, D_MODEL), jnp.float32) * 0.01,
    }
    packed = build_packed_params(raw, np.asarray(char_table))

    # inputs
    input_ids = jax.random.randint(keys[13], (B, S), 0, VOCAB)
    source_char_ids = jax.random.randint(keys[14], (B, S, CHAR_LEN), 0, CHAR_VOCAB)

    # glue: subword embedding lookup (base-model table gather stays in XLA); the
    # char-embedding gather is fused into the kernel (only ids hit HBM).
    sub_emb = jnp.take(emb_table, input_ids.reshape(-1), axis=0).astype(jnp.bfloat16)
    char_ids = source_char_ids.reshape(N_TOKENS, CHAR_LEN).astype(jnp.int32)

    out = char_aware_forward(char_ids, sub_emb, packed)
    out = jax.block_until_ready(out)
    inputs_embeds = out.reshape(B, S, D_MODEL)

    # f32 reference; tolerance covers the kernel's bf16 weight/activation storage.
    ref = reference_forward(char_ids, sub_emb.astype(jnp.float32), char_table, raw)
    np.testing.assert_allclose(np.asarray(out), np.asarray(ref), rtol=2e-2, atol=2e-3)

    # TODO(synk): base_model(inputs_embeds=...) (T5 + LoRA) is not reimplemented here.
    print("KERNEL_OK")
</pallas_src>

<mosaic_0001>
module attributes {stable_mosaic.version = 11 : i64} {
  func.func @_char_aware_kernel(%arg0: i32, %arg1: memref<16x12xi32, #tpu.memory_space<vmem>>, %arg2: memref<16x32xbf16, #tpu.memory_space<vmem>>, %arg3: memref<768x512xbf16, #tpu.memory_space<vmem>>, %arg4: memref<1x512xf32, #tpu.memory_space<vmem>>, %arg5: memref<32x128xbf16, #tpu.memory_space<vmem>>, %arg6: memref<48x128xbf16, #tpu.memory_space<vmem>>, %arg7: memref<1x128xf32, #tpu.memory_space<vmem>>, %arg8: memref<16x128xf32, #tpu.memory_space<vmem>>) attributes {dimension_semantics = [#tpu.dimension_semantics<parallel>], iteration_bounds = array<i64: 1>, scalar_prefetch = 0 : i64, scratch_operands = 0 : i64, tpu.core_type = #tpu.core_type<tc>, window_params = [{transform_indices = @transform_0, window_bounds = array<i64: 16, 12>}, {transform_indices = @transform_1, window_bounds = array<i64: 16, 32>}, {pipeline_mode = #tpu.pipeline_mode<synchronous>, transform_indices = @transform_2, window_bounds = array<i64: 768, 512>}, {pipeline_mode = #tpu.pipeline_mode<synchronous>, transform_indices = @transform_3, window_bounds = array<i64: 1, 512>}, {pipeline_mode = #tpu.pipeline_mode<synchronous>, transform_indices = @transform_4, window_bounds = array<i64: 32, 128>}, {pipeline_mode = #tpu.pipeline_mode<synchronous>, transform_indices = @transform_5, window_bounds = array<i64: 48, 128>}, {pipeline_mode = #tpu.pipeline_mode<synchronous>, transform_indices = @transform_6, window_bounds = array<i64: 1, 128>}, {transform_indices = @transform_7, window_bounds = array<i64: 16, 128>}]} {
    %c0 = arith.constant 0 : index
    %c0_0 = arith.constant 0 : index
    %0 = vector.load %arg3[%c0, %c0_0] : memref<768x512xbf16, #tpu.memory_space<vmem>>, vector<768x512xbf16>
    %c0_1 = arith.constant 0 : index
    %c0_2 = arith.constant 0 : index
    %1 = vector.load %arg5[%c0_1, %c0_2] : memref<32x128xbf16, #tpu.memory_space<vmem>>, vector<32x128xbf16>
    %c0_3 = arith.constant 0 : index
    %c0_4 = arith.constant 0 : index
    %2 = vector.load %arg6[%c0_3, %c0_4] : memref<48x128xbf16, #tpu.memory_space<vmem>>, vector<48x128xbf16>
    %c0_5 = arith.constant 0 : index
    %c0_6 = arith.constant 0 : index
    %3 = vector.load %arg4[%c0_5, %c0_6] : memref<1x512xf32, #tpu.memory_space<vmem>>, vector<1x512xf32>
    %4 = vector.shape_cast %3 : vector<1x512xf32> to vector<1x512xf32>
    %5 = vector.broadcast %4 : vector<1x512xf32> to vector<16x512xf32>
    %c0_7 = arith.constant 0 : index
    %c0_8 = arith.constant 0 : index
    %6 = vector.load %arg7[%c0_7, %c0_8] : memref<1x128xf32, #tpu.memory_space<vmem>>, vector<1x128xf32>
    %7 = vector.shape_cast %6 : vector<1x128xf32> to vector<1x128xf32>
    %8 = vector.broadcast %7 : vector<1x128xf32> to vector<16x128xf32>
    %9 = tpu.iota {dimensions = array<i32: 1>} : vector<16x768xi32>
    %c0_i32 = arith.constant 0 : i32
    %c16_i32 = arith.constant 16 : i32
    %10 = arith.muli %c0_i32, %c16_i32 : i32
    %11 = tpu.assume_multiple %10, 16 : i32
    %12 = arith.index_cast %11 : i32 to index
    %c0_9 = arith.constant 0 : index
    %13 = vector.load %arg1[%12, %c0_9] : memref<16x12xi32, #tpu.memory_space<vmem>>, vector<16x12xi32>
    %14 = vector.extract_strided_slice %13 {offsets = [0, 0], sizes = [16, 1], strides = [1, 1]} : vector<16x12xi32> to vector<16x1xi32>
    %15 = vector.broadcast %14 : vector<16x1xi32> to vector<16x768xi32>
    %16 = arith.cmpi eq, %9, %15 : vector<16x768xi32>
    %17 = vector.extract_strided_slice %13 {offsets = [0, 1], sizes = [16, 1], strides = [1, 1]} : vector<16x12xi32> to vector<16x1xi32>
    %c64_i32 = arith.constant 64 : i32
    %18 = vector.broadcast %c64_i32 : i32 to vector<16x1xi32>
    %19 = arith.addi %17, %18 : vector<16x1xi32>
    %20 = vector.broadcast %19 : vector<16x1xi32> to vector<16x768xi32>
    %21 = arith.cmpi eq, %9, %20 : vector<16x768xi32>
    %22 = arith.ori %16, %21 : vector<16x768xi1>
    %23 = vector.extract_strided_slice %13 {offsets = [0, 2], sizes = [16, 1], strides = [1, 1]} : vector<16x12xi32> to vector<16x1xi32>
    %c128_i32 = arith.constant 128 : i32
    %24 = vector.broadcast %c128_i32 : i32 to vector<16x1xi32>
    %25 = arith.addi %23, %24 : vector<16x1xi32>
    %26 = vector.broadcast %25 : vector<16x1xi32> to vector<16x768xi32>
    %27 = arith.cmpi eq, %9, %26 : vector<16x768xi32>
    %28 = arith.ori %22, %27 : vector<16x768xi1>
    %29 = vector.extract_strided_slice %13 {offsets = [0, 3], sizes = [16, 1], strides = [1, 1]} : vector<16x12xi32> to vector<16x1xi32>
    %c192_i32 = arith.constant 192 : i32
    %30 = vector.broadcast %c192_i32 : i32 to vector<16x1xi32>
    %31 = arith.addi %29, %30 : vector<16x1xi32>
    %32 = vector.broadcast %31 : vector<16x1xi32> to vector<16x768xi32>
    %33 = arith.cmpi eq, %9, %32 : vector<16x768xi32>
    %34 = arith.ori %28, %33 : vector<16x768xi1>
    %35 = vector.extract_strided_slice %13 {offsets = [0, 4], sizes = [16, 1], strides = [1, 1]} : vector<16x12xi32> to vector<16x1xi32>
    %c256_i32 = arith.constant 256 : i32
    %36 = vector.broadcast %c256_i32 : i32 to vector<16x1xi32>
    %37 = arith.addi %35, %36 : vector<16x1xi32>
    %38 = vector.broadcast %37 : vector<16x1xi32> to vector<16x768xi32>
    %39 = arith.cmpi eq, %9, %38 : vector<16x768xi32>
    %40 = arith.ori %34, %39 : vector<16x768xi1>
    %41 = vector.extract_strided_slice %13 {offsets = [0, 5], sizes = [16, 1], strides = [1, 1]} : vector<16x12xi32> to vector<16x1xi32>
    %c320_i32 = arith.constant 320 : i32
    %42 = vector.broadcast %c320_i32 : i32 to vector<16x1xi32>
    %43 = arith.addi %41, %42 : vector<16x1xi32>
    %44 = vector.broadcast %43 : vector<16x1xi32> to vector<16x768xi32>
    %45 = arith.cmpi eq, %9, %44 : vector<16x768xi32>
    %46 = arith.ori %40, %45 : vector<16x768xi1>
    %47 = vector.extract_strided_slice %13 {offsets = [0, 6], sizes = [16, 1], strides = [1, 1]} : vector<16x12xi32> to vector<16x1xi32>
    %c384_i32 = arith.constant 384 : i32
    %48 = vector.broadcast %c384_i32 : i32 to vector<16x1xi32>
    %49 = arith.addi %47, %48 : vector<16x1xi32>
    %50 = vector.broadcast %49 : vector<16x1xi32> to vector<16x768xi32>
    %51 = arith.cmpi eq, %9, %50 : vector<16x768xi32>
    %52 = arith.ori %46, %51 : vector<16x768xi1>
    %53 = vector.extract_strided_slice %13 {offsets = [0, 7], sizes = [16, 1], strides = [1, 1]} : vector<16x12xi32> to vector<16x1xi32>
    %c448_i32 = arith.constant 448 : i32
    %54 = vector.broadcast %c448_i32 : i32 to vector<16x1xi32>
    %55 = arith.addi %53, %54 : vector<16x1xi32>
    %56 = vector.broadcast %55 : vector<16x1xi32> to vector<16x768xi32>
    %57 = arith.cmpi eq, %9, %56 : vector<16x768xi32>
    %58 = arith.ori %52, %57 : vector<16x768xi1>
    %59 = vector.extract_strided_slice %13 {offsets = [0, 8], sizes = [16, 1], strides = [1, 1]} : vector<16x12xi32> to vector<16x1xi32>
    %c512_i32 = arith.constant 512 : i32
    %60 = vector.broadcast %c512_i32 : i32 to vector<16x1xi32>
    %61 = arith.addi %59, %60 : vector<16x1xi32>
    %62 = vector.broadcast %61 : vector<16x1xi32> to vector<16x768xi32>
    %63 = arith.cmpi eq, %9, %62 : vector<16x768xi32>
    %64 = arith.ori %58, %63 : vector<16x768xi1>
    %65 = vector.extract_strided_slice %13 {offsets = [0, 9], sizes = [16, 1], strides = [1, 1]} : vector<16x12xi32> to vector<16x1xi32>
    %c576_i32 = arith.constant 576 : i32
    %66 = vector.broadcast %c576_i32 : i32 to vector<16x1xi32>
    %67 = arith.addi %65, %66 : vector<16x1xi32>
    %68 = vector.broadcast %67 : vector<16x1xi32> to vector<16x768xi32>
    %69 = arith.cmpi eq, %9, %68 : vector<16x768xi32>
    %70 = arith.ori %64, %69 : vector<16x768xi1>
    %71 = vector.extract_strided_slice %13 {offsets = [0, 10], sizes = [16, 1], strides = [1, 1]} : vector<16x12xi32> to vector<16x1xi32>
    %c640_i32 = arith.constant 640 : i32
    %72 = vector.broadcast %c640_i32 : i32 to vector<16x1xi32>
    %73 = arith.addi %71, %72 : vector<16x1xi32>
    %74 = vector.broadcast %73 : vector<16x1xi32> to vector<16x768xi32>
    %75 = arith.cmpi eq, %9, %74 : vector<16x768xi32>
    %76 = arith.ori %70, %75 : vector<16x768xi1>
    %77 = vector.extract_strided_slice %13 {offsets = [0, 11], sizes = [16, 1], strides = [1, 1]} : vector<16x12xi32> to vector<16x1xi32>
    %c704_i32 = arith.constant 704 : i32
    %78 = vector.broadcast %c704_i32 : i32 to vector<16x1xi32>
    %79 = arith.addi %77, %78 : vector<16x1xi32>
    %80 = vector.broadcast %79 : vector<16x1xi32> to vector<16x768xi32>
    %81 = arith.cmpi eq, %9, %80 : vector<16x768xi32>
    %82 = arith.ori %76, %81 : vector<16x768xi1>
    %83 = arith.extui %82 : vector<16x768xi1> to vector<16x768xi32>
    %84 = arith.sitofp %83 : vector<16x768xi32> to vector<16x768xf32>
    %85 = arith.truncf %84 : vector<16x768xf32> to vector<16x768xbf16>
    %cst = arith.constant dense<0.000000e+00> : vector<16x512xf32>
    %86 = tpu.matmul %85, %0, %cst {dimension_numbers = #tpu.dot_dimension_numbers<[1], [0], [0], [1], [0, 0, 1, 1], [], []>} : vector<16x768xbf16>, vector<768x512xbf16>, vector<16x512xf32> -> vector<16x512xf32>
    %87 = arith.addf %86, %5 : vector<16x512xf32>
    %cst_10 = arith.constant 0.000000e+00 : f32
    %88 = vector.broadcast %cst_10 : f32 to vector<16x512xf32>
    %89 = arith.maximumf %87, %88 : vector<16x512xf32>
    %90 = vector.extract_strided_slice %89 {offsets = [0, 0], sizes = [16, 48], strides = [1, 1]} : vector<16x512xf32> to vector<16x48xf32>
    %91 = vector.extract_strided_slice %89 {offsets = [0, 48], sizes = [16, 48], strides = [1, 1]} : vector<16x512xf32> to vector<16x48xf32>
    %92 = arith.maximumf %90, %91 : vector<16x48xf32>
    %93 = vector.extract_strided_slice %89 {offsets = [0, 96], sizes = [16, 48], strides = [1, 1]} : vector<16x512xf32> to vector<16x48xf32>
    %94 = arith.maximumf %92, %93 : vector<16x48xf32>
    %95 = vector.extract_strided_slice %89 {offsets = [0, 144], sizes = [16, 48], strides = [1, 1]} : vector<16x512xf32> to vector<16x48xf32>
    %96 = arith.maximumf %94, %95 : vector<16x48xf32>
    %97 = vector.extract_strided_slice %89 {offsets = [0, 192], sizes = [16, 48], strides = [1, 1]} : vector<16x512xf32> to vector<16x48xf32>
    %98 = arith.maximumf %96, %97 : vector<16x48xf32>
    %99 = vector.extract_strided_slice %89 {offsets = [0, 240], sizes = [16, 48], strides = [1, 1]} : vector<16x512xf32> to vector<16x48xf32>
    %100 = arith.maximumf %98, %99 : vector<16x48xf32>
    %101 = vector.extract_strided_slice %89 {offsets = [0, 288], sizes = [16, 48], strides = [1, 1]} : vector<16x512xf32> to vector<16x48xf32>
    %102 = arith.maximumf %100, %101 : vector<16x48xf32>
    %103 = vector.extract_strided_slice %89 {offsets = [0, 336], sizes = [16, 48], strides = [1, 1]} : vector<16x512xf32> to vector<16x48xf32>
    %104 = arith.maximumf %102, %103 : vector<16x48xf32>
    %105 = vector.extract_strided_slice %89 {offsets = [0, 384], sizes = [16, 48], strides = [1, 1]} : vector<16x512xf32> to vector<16x48xf32>
    %106 = arith.maximumf %104, %105 : vector<16x48xf32>
    %107 = vector.extract_strided_slice %89 {offsets = [0, 432], sizes = [16, 48], strides = [1, 1]} : vector<16x512xf32> to vector<16x48xf32>
    %108 = arith.maximumf %106, %107 : vector<16x48xf32>
    %109 = arith.index_cast %11 : i32 to index
    %c0_11 = arith.constant 0 : index
    %110 = vector.load %arg2[%109, %c0_11] : memref<16x32xbf16, #tpu.memory_space<vmem>>, vector<16x32xbf16>
    %cst_12 = arith.constant dense<0.000000e+00> : vector<16x128xf32>
    %111 = tpu.matmul %110, %1, %cst_12 {dimension_numbers = #tpu.dot_dimension_numbers<[1], [0], [0], [1], [0, 0, 1, 1], [], []>} : vector<16x32xbf16>, vector<32x128xbf16>, vector<16x128xf32> -> vector<16x128xf32>
    %112 = arith.truncf %108 : vector<16x48xf32> to vector<16x48xbf16>
    %cst_13 = arith.constant dense<0.000000e+00> : vector<16x128xf32>
    %113 = tpu.matmul %112, %2, %cst_13 {dimension_numbers = #tpu.dot_dimension_numbers<[1], [0], [0], [1], [0, 0, 1, 1], [], []>} : vector<16x48xbf16>, vector<48x128xbf16>, vector<16x128xf32> -> vector<16x128xf32>
    %114 = arith.addf %111, %113 : vector<16x128xf32>
    %115 = arith.addf %114, %8 : vector<16x128xf32>
    %116 = arith.index_cast %11 : i32 to index
    %c0_14 = arith.constant 0 : index
    %117 = vector.load %arg8[%116, %c0_14] : memref<16x128xf32, #tpu.memory_space<vmem>>, vector<16x128xf32>
    tpu.vector_store %arg8[%116, %c0_14], %115 {strides = array<i32>} : memref<16x128xf32, #tpu.memory_space<vmem>>, vector<16x128xf32>,
    %c1_i32 = arith.constant 1 : i32
    return
  }
  func.func @transform_0(%arg0: i32) -> (i32, i32) {
    %c0_i32 = arith.constant 0 : i32
    %c0_i32_0 = arith.constant 0 : i32
    return %arg0, %c0_i32 : i32, i32
  }
  func.func @transform_1(%arg0: i32) -> (i32, i32) {
    %c0_i32 = arith.constant 0 : i32
    %c0_i32_0 = arith.constant 0 : i32
    return %arg0, %c0_i32 : i32, i32
  }
  func.func @transform_2(%arg0: i32) -> (i32, i32) {
    %c0_i32 = arith.constant 0 : i32
    %c0_i32_0 = arith.constant 0 : i32
    %c0_i32_1 = arith.constant 0 : i32
    return %c0_i32, %c0_i32_0 : i32, i32
  }
  func.func @transform_3(%arg0: i32) -> (i32, i32) {
    %c0_i32 = arith.constant 0 : i32
    %c0_i32_0 = arith.constant 0 : i32
    %c0_i32_1 = arith.constant 0 : i32
    return %c0_i32, %c0_i32_0 : i32, i32
  }
  func.func @transform_4(%arg0: i32) -> (i32, i32) {
    %c0_i32 = arith.constant 0 : i32
    %c0_i32_0 = arith.constant 0 : i32
    %c0_i32_1 = arith.constant 0 : i32
    return %c0_i32, %c0_i32_0 : i32, i32
  }
  func.func @transform_5(%arg0: i32) -> (i32, i32) {
    %c0_i32 = arith.constant 0 : i32
    %c0_i32_0 = arith.constant 0 : i32
    %c0_i32_1 = arith.constant 0 : i32
    return %c0_i32, %c0_i32_0 : i32, i32
  }
  func.func @transform_6(%arg0: i32) -> (i32, i32) {
    %c0_i32 = arith.constant 0 : i32
    %c0_i32_0 = arith.constant 0 : i32
    %c0_i32_1 = arith.constant 0 : i32
    return %c0_i32, %c0_i32_0 : i32, i32
  }
  func.func @transform_7(%arg0: i32) -> (i32, i32) {
    %c0_i32 = arith.constant 0 : i32
    %c0_i32_0 = arith.constant 0 : i32
    return %arg0, %c0_i32 : i32, i32
  }
}

</mosaic_0001>

<bundles_post_ra>
// kernel: tpu_custom_call.1
= control target key start
LH: loop header
LB: loop body
LE: loop exit
PB: predicated region body
PF: predicated region fallthrough
CT: control target
= control target key end

     0   :  { %12 = vsyncpa [#allocation3], 0  ;;  %s3715_s0 = inlined_call_operand.hbm [shape: s32[16,12], index: 0, kind: input, shape index: {}]   ;;  %s3716_s1 = inlined_call_operand.hbm [shape: bf16[16,32], index: 1, kind: input, shape index: {}]   ;;  %s3717_s2 = inlined_call_operand.hbm [shape: bf16[768,512], index: 2, kind: input, shape index: {}]   ;;  %s3718_s3 = inlined_call_operand.vmem [shape: f32[1,512], index: 3, kind: input, shape index: {}]   ;;  %s3719_s4 = inlined_call_operand.hbm [shape: bf16[32,128], index: 4, kind: input, shape index: {}]   ;;  %s3720_s5 = inlined_call_operand.hbm [shape: bf16[48,128], index: 5, kind: input, shape index: {}]   ;;  %s3721_s6 = inlined_call_operand.vmem [shape: f32[1,128], index: 6, kind: input, shape index: {}]   ;;  %s3722_s7 = inlined_call_operand.hbm [shape: f32[16,128], index: 7, kind: output, shape index: {}]  }
   0x1   :  { %13 = vsyncpa [#allocation6], 0 }
   0x2   :  { %14 = vsyncpa [#allocation9], 0 }
   0x3   :  { %15 = vsyncpa [#allocation4], 0  ;;  %s2960_s24 = smov [#allocation5]  }
   0x4   :  { %s33_s25 = sshll.u32 %s2960_s24, 4  ;;  %s34_s25 = int_to_ptr.vmem [resolvable:$true] %s33_s25 }
   0x5   :  { %s2840_s26 = scalar_lea.vmem %s34_s25, 128  ;;  %p2845_p1 = scmp.lt.s32.totalorder %s34_s25, %s34_s25 }
   0x6   :  { %p2841_p0 = scmp.ne.s32.totalorder %s34_s25, %s2840_s26  ;;  %p2846_p2 = scmp.lt.s32.totalorder %s2840_s26, %s2840_s26 }
   0x8   :  { %p2847_p3 = por %p2846_p2, %p2845_p1 }
   0xa   :  { %p2848_p4 = pnand %p2847_p3, %p2841_p0 }
   0xc   :  { %2851 = shalt.err (!%p2848_p4)
}
   0xd   :  { %s2961_s27 = smov 64   ;;  %s2962_s28 = smov 4  }
   0xe   :  { %39 = dma.hbm_to_vmem [thread:$0]  %s3716_s1, 128, %s34_s25, [#allocation6], %s2961_s27, %s2961_s27, %s2962_s28  }
   0xf   :  { %s2963_s8 = smov [#allocation8]   ;;  %s2964_s10 = smov [#allocation2]  }
  0x10   :  { %s59_s9 = sshll.u32 %s2963_s8, 4  ;;  %s21_s11 = sshll.u32 %s2964_s10, 4  ;;  %s60_s9 = int_to_ptr.vmem [resolvable:$true] %s59_s9  ;;  %s22_s11 = int_to_ptr.vmem [resolvable:$true] %s21_s11 }
  0x11   :  { %s2860_s12 = scalar_lea.vmem %s60_s9, 256  ;;  %p2865_p6 = scmp.lt.s32.totalorder %s60_s9, %s60_s9 }
  0x12   :  { %p2861_p5 = scmp.ne.s32.totalorder %s60_s9, %s2860_s12  ;;  %p2866_p7 = scmp.lt.s32.totalorder %s2860_s12, %s2860_s12 }
  0x14   :  { %p2867_p8 = por %p2866_p7, %p2865_p6 }
  0x16   :  { %p2868_p9 = pnand %p2867_p8, %p2861_p5 }
  0x18   :  { %2871 = shalt.err (!%p2868_p9)
}
  0x19   :  { %65 = dma.hbm_to_vmem [thread:$0]  %s3719_s4, 256, %s60_s9, [#allocation9], %s2961_s27, %s2961_s27, %s2962_s28  }
  0x1a   :  { %s2880_s1 = scalar_lea.vmem %s22_s11, 256  ;;  %p2885_p11 = scmp.lt.s32.totalorder %s22_s11, %s22_s11 }
  0x1b   :  { %p2881_p10 = scmp.ne.s32.totalorder %s22_s11, %s2880_s1  ;;  %p2886_p12 = scmp.lt.s32.totalorder %s2880_s1, %s2880_s1 }
  0x1d   :  { %p2887_p13 = por %p2886_p12, %p2885_p11 }
  0x1f   :  { %p2888_p0 = pnand %p2887_p13, %p2881_p10 }
  0x21   :  { %2891 = shalt.err (!%p2888_p0)
}
  0x22   :  { %s2965_s15 = smov 128   ;;  %s2966_s16 = smov 8  }
  0x23   :  { %27 = dma.hbm_to_vmem [thread:$0]  %s3715_s0, 256, %s22_s11, [#allocation3], %s2965_s15, %s2965_s15, %s2966_s16  }
  0x24   :  { %s2967_s19 = smov [#allocation7]  }
  0x25   :  { %s45_s20 = sshll.u32 %s2967_s19, 4  ;;  %s46_s20 = int_to_ptr.vmem [resolvable:$true] %s45_s20 }
  0x26   :  { %s2900_s4 = scalar_lea.vmem %s46_s20, 24576  ;;  %p2905_p2 = scmp.lt.s32.totalorder %s46_s20, %s46_s20 }
  0x27   :  { %p2901_p1 = scmp.ne.s32.totalorder %s46_s20, %s2900_s4  ;;  %p2906_p3 = scmp.lt.s32.totalorder %s2900_s4, %s2900_s4 }
  0x29   :  { %p2907_p4 = por %p2906_p3, %p2905_p2 }
  0x2b   :  { %p2908_p5 = pnand %p2907_p4, %p2901_p1 }
  0x2d   :  { %2911 = shalt.err (!%p2908_p5)
}
  0x2e   :  { %s2968_s21 = smov 256   ;;  %s2969_s22 = smov 16  }
  0x2f   :  { %51 = dma.hbm_to_vmem [thread:$0]  %s3717_s2, 24576, %s46_s20, [#allocation6], %s2968_s21, %s2968_s21, %s2969_s22  }
  0x30   :  { %s2970_s25 = smov [#allocation10]  }
  0x31   :  { %s71_s26 = sshll.u32 %s2970_s25, 4  ;;  %s72_s26 = int_to_ptr.vmem [resolvable:$true] %s71_s26 }
  0x32   :  { %s2920_s0 = scalar_lea.vmem %s72_s26, 384  ;;  %p2925_p7 = scmp.lt.s32.totalorder %s72_s26, %s72_s26 }
  0x33   :  { %p2921_p6 = scmp.ne.s32.totalorder %s72_s26, %s2920_s0  ;;  %p2926_p8 = scmp.lt.s32.totalorder %s2920_s0, %s2920_s0 }
  0x35   :  { %p2927_p9 = por %p2926_p8, %p2925_p7 }
  0x37   :  { %p2928_p10 = pnand %p2927_p9, %p2921_p6 }
  0x39   :  { %2931 = shalt.err (!%p2928_p10)
}
  0x3a   :  { %77 = dma.hbm_to_vmem [thread:$0]  %s3720_s5, 384, %s72_s26, [#allocation9], %s2961_s27, %s2961_s27, %s2962_s28  }
  0x3b   :  { %2952 = dma.done.wait [#allocation3], 256  }
  0x3c   :  { %2953 = vsyncadd [#allocation3], 4294967040 }
  0x3d   :  { %2954 = dma.done.wait [#allocation6], 24704  }
  0x3e   :  { %2955 = vsyncadd [#allocation6], 4294942592 }
  0x3f   :  { %2956 = dma.done.wait [#allocation9], 640  }
  0x40   :  { %2957 = vsyncadd [#allocation9], 4294966656  ;;  %v2971_v0 = vmov 0   ;;  %v2972_v1 = vmov 1   ;;  %v3059_v2 = vld [vmem:[#allocation2] sm:$0xff]  ;;  %v3061_v3 = vld [vmem:[#allocation2 + $0x8] sm:$0xff] }
  0x41   :  { %2469 = vset.pattern.permute.xlu0 %v2971_v0  ;;  %2470 = vset.pattern.permute.xlu1 %v2972_v1  ;;  %v354_v4 = vadd.s32 64, %v3059_v2  ;;  %v355_v5 = vadd.s32 64, %v3061_v3  ;;  %v386_v6 = vadd.s32 128, %v3059_v2  ;;  %v387_v7 = vadd.s32 128, %v3061_v3  ;;  %v2538_v10 = vld [vmem:[#allocation7 + $0xe4] ss:$16 sps:$4 sm:$0xff]  }
  0x42   :  { %337 = vperm.xlu0 %2469, %v3059_v2   ;;  %v2973_v8 = vmov 2   ;;  %v419_v9 = vadd.s32 192, %v3061_v3  ;;  %v2540_v11 = vld [vmem:[#allocation7 + $0x2e4] ss:$16 sps:$4 sm:$0xff]   ;;  %v418_v12 = vadd.s32 192, %v3059_v2  ;;  %v2974_v13 = vmov 3   ;;  %1696 = vmatprep.subr.bf16.mxu0 %v2538_v10 }
  0x43   :  { %357 = vperm.xlu1 %2470, %v354_v4   ;;  %1739 = vmatprep.subr.bf16.mxu1 %v2540_v11  ;;  %v2542_v14 = vld [vmem:[#allocation7 + $0xe0] ss:$16 sps:$4 sm:$0xff]   ;;  %v482_v16 = vadd.s32 320, %v3059_v2  ;;  %v450_v17 = vadd.s32 256, %v3059_v2  ;;  %v2975_v18 = vmov 5   ;;  %v2976_v23 = vmov 4  }
  0x44   :  { %v2543_v15 = vld [vmem:[#allocation7 + $0x2e0] ss:$16 sps:$4 sm:$0xff]   ;;  %1697 = vmatpush1.bf16.msra.mxu0 %v2542_v14  ;;  %v2544_v19 = vld [vmem:[#allocation7 + $0xc4] ss:$16 sps:$4 sm:$0xff]   ;;  %v515_v24 = vadd.s32 384, %v3061_v3  ;;  %v451_v25 = vadd.s32 256, %v3061_v3 }
  0x45   :  { %1740 = vmatpush1.bf16.msra.mxu1 %v2543_v15  ;;  %v2546_v20 = vld [vmem:[#allocation7 + $0x2c4] ss:$16 sps:$4 sm:$0xff]   ;;  %v2548_v21 = vld [vmem:[#allocation7 + $0xc0] ss:$16 sps:$4 sm:$0xff]   ;;  %1698 = vmatprep.subr.bf16.mxu0 %v2544_v19  ;;  %v2977_v26 = vmov 6   ;;  %v578_v29 = vadd.s32 512, %v3059_v2 }
  0x46   :  { %340 = vperm.xlu0 %2469, %v3061_v3   ;;  %v2549_v22 = vld [vmem:[#allocation7 + $0x2c0] ss:$16 sps:$4 sm:$0xff]   ;;  %1741 = vmatprep.subr.bf16.mxu1 %v2546_v20  ;;  %v2550_v27 = vld [vmem:[#allocation7 + $0xa4] ss:$16 sps:$4 sm:$0xff]   ;;  %v483_v32 = vadd.s32 320, %v3061_v3  ;;  %v2978_v33 = vmov 8  }
  0x47   :  { %360 = vperm.xlu1 %2470, %v355_v5   ;;  %v2552_v28 = vld [vmem:[#allocation7 + $0x2a4] ss:$16 sps:$4 sm:$0xff]   ;;  %v2554_v30 = vld [vmem:[#allocation7 + $0xa0] ss:$16 sps:$4 sm:$0xff]   ;;  %v611_v38 = vadd.s32 576, %v3061_v3  ;;  %v514_v39 = vadd.s32 384, %v3059_v2 }
  0x48   :  { %1699 = vmatpush1.bf16.msra.mxu0 %v2548_v21  ;;  %v2555_v31 = vld [vmem:[#allocation7 + $0x2a0] ss:$16 sps:$4 sm:$0xff]   ;;  %v2556_v34 = vld [vmem:[#allocation7 + $0x84] ss:$16 sps:$4 sm:$0xff]   ;;  %v2979_v42 = vmov 9   ;;  %v674_v45 = vadd.s32 704, %v3059_v2 }
  0x49   :  { %1742 = vmatpush1.bf16.msra.mxu1 %v2549_v22  ;;  %1700 = vmatprep.subr.bf16.mxu0 %v2550_v27  ;;  %v2558_v35 = vld [vmem:[#allocation7 + $0x284] ss:$16 sps:$4 sm:$0xff]   ;;  %v2560_v36 = vld [vmem:[#allocation7 + $0x80] ss:$16 sps:$4 sm:$0xff]   ;;  %v546_v46 = vadd.s32 448, %v3059_v2  ;;  %v2980_v51 = vmov 11  }
  0x4a   :  { %2471 = vset.pattern.permute.xlu0 %v2973_v8  ;;  %1743 = vmatprep.subr.bf16.mxu1 %v2552_v28  ;;  %v2561_v37 = vld [vmem:[#allocation7 + $0x280] ss:$16 sps:$4 sm:$0xff]   ;;  %v2562_v40 = vld [vmem:[#allocation7 + $0x64] ss:$16 sps:$4 sm:$0xff]   ;;  %v2981_v54 = vmov 7   ;;  %v547_v55 = vadd.s32 448, %v3061_v3 }
  0x4b   :  { %389 = vperm.xlu0 %2471, %v386_v6   ;;  %2472 = vset.pattern.permute.xlu1 %v2973_v8  ;;  %v2564_v41 = vld [vmem:[#allocation7 + $0x264] ss:$16 sps:$4 sm:$0xff]   ;;  %v2566_v43 = vld [vmem:[#allocation7 + $0x60] ss:$16 sps:$4 sm:$0xff]   ;;  %v579_v60 = vadd.s32 512, %v3061_v3  ;;  %v610_v4 = vadd.s32 576, %v3059_v2 }
  0x4c   :  { %392 = vperm.xlu1 %2472, %v387_v7   ;;  %1701 = vmatpush1.bf16.msra.mxu0 %v2554_v30  ;;  %v2567_v44 = vld [vmem:[#allocation7 + $0x260] ss:$16 sps:$4 sm:$0xff]   ;;  %v2568_v47 = vld [vmem:[#allocation7 + $0x44] ss:$16 sps:$4 sm:$0xff]   ;;  %v2982_v14 = vmov 10   ;;  %s2985_s28 = smov 80  }
  0x4d   :  { %1744 = vmatpush1.bf16.msra.mxu1 %v2555_v31  ;;  %1702 = vmatprep.subr.bf16.mxu0 %v2556_v34  ;;  %v2570_v48 = vld [vmem:[#allocation7 + $0x244] ss:$16 sps:$4 sm:$0xff]   ;;  %v2572_v49 = vld [vmem:[#allocation7 + $0x40] ss:$16 sps:$4 sm:$0xff]   ;;  %s2986_s8 = smov 112   ;;  %s2989_s9 = smov 48  }
  0x4e   :  { %1745 = vmatprep.subr.bf16.mxu1 %v2558_v35  ;;  %v2573_v50 = vld [vmem:[#allocation7 + $0x240] ss:$16 sps:$4 sm:$0xff]   ;;  %v2574_v52 = vld [vmem:[#allocation7 + $0x24] ss:$16 sps:$4 sm:$0xff]   ;;  %s2990_s12 = smov [#allocation11]  }
  0x4f   :  { %2474 = vset.pattern.permute.xlu0 %v2974_v13  ;;  %v2576_v53 = vld [vmem:[#allocation7 + $0x224] ss:$16 sps:$4 sm:$0xff]   ;;  %v2578_v56 = vld [vmem:[#allocation7 + $0x20] ss:$16 sps:$4 sm:$0xff]   ;;  %s2186_s13 = sshll.u32 %s2990_s12, 4  ;;  %s2187_s13 = int_to_ptr.vmem [resolvable:$true] %s2186_s13 }
  0x50   :  { %424 = vperm.xlu0 %2474, %v419_v9   ;;  %2473 = vset.pattern.permute.xlu1 %v2974_v13  ;;  %v2579_v57 = vld [vmem:[#allocation7 + $0x220] ss:$16 sps:$4 sm:$0xff]   ;;  %v2580_v58 = vld [vmem:[#allocation7 + $0x4] ss:$16 sps:$4 sm:$0xff]   ;;  %s2932_s14 = scalar_lea.vmem %s2187_s13, 256  ;;  %p2937_p12 = scmp.lt.s32.totalorder %s2187_s13, %s2187_s13 }
  0x51   :  { %421 = vperm.xlu1 %2473, %v418_v12   ;;  %1703 = vmatpush1.bf16.msra.mxu0 %v2560_v36  ;;  %v2582_v59 = vld [vmem:[#allocation7 + $0x204] ss:$16 sps:$4 sm:$0xff]   ;;  %v2584_v61 = vld [vmem:[#allocation7] ss:$16 sps:$4 sm:$0xff]   ;;  %v642_v12 = vadd.s32 640, %v3059_v2  ;;  %p2933_p11 = scmp.ne.s32.totalorder %s2187_s13, %s2932_s14  ;;  %p2938_p13 = scmp.lt.s32.totalorder %s2932_s14, %s2932_s14 }
  0x52   :  { %1746 = vmatpush1.bf16.msra.mxu1 %v2561_v37  ;;  %1704 = vmatprep.subr.bf16.mxu0 %v2562_v40  ;;  %v2585_v62 = vld [vmem:[#allocation7 + $0x200] ss:$16 sps:$4 sm:$0xff]   ;;  %v2586_v63 = vld [vmem:[#allocation7 + $0x1e4] ss:$16 sps:$4 sm:$0xff]   ;;  %v2639_v37 = vld [vmem:[#allocation7 + $0xec] ss:$16 sps:$4 sm:$0xff]  }
  0x53   :  { %1747 = vmatprep.subr.bf16.mxu1 %v2564_v41  ;;  %v2588_v0 = vld [vmem:[#allocation7 + $0x3e4] ss:$16 sps:$4 sm:$0xff]   ;;  %v2590_v1 = vld [vmem:[#allocation7 + $0x1e0] ss:$16 sps:$4 sm:$0xff]   ;;  %p2939_p0 = por %p2938_p13, %p2937_p12 }
  0x54   :  { %2476 = vset.pattern.permute.xlu0 %v2975_v18  ;;  %v2591_v5 = vld [vmem:[#allocation7 + $0x3e0] ss:$16 sps:$4 sm:$0xff]   ;;  %v2592_v6 = vld [vmem:[#allocation7 + $0x1c4] ss:$16 sps:$4 sm:$0xff]  }
  0x55   :  { %485 = vperm.xlu0 %2476, %v482_v16   ;;  %2475 = vset.pattern.permute.xlu1 %v2976_v23  ;;  %v2594_v7 = vld [vmem:[#allocation7 + $0x3c4] ss:$16 sps:$4 sm:$0xff]   ;;  %v2596_v8 = vld [vmem:[#allocation7 + $0x1c0] ss:$16 sps:$4 sm:$0xff]   ;;  %v675_v23 = vadd.s32 704, %v3061_v3  ;;  %p2940_p1 = pnand %p2939_p0, %p2933_p11 }
  0x56   :  { %453 = vperm.xlu1 %2475, %v450_v17   ;;  %1705 = vmatpush1.bf16.msra.mxu0 %v2566_v43  ;;  %v2597_v9 = vld [vmem:[#allocation7 + $0x3c0] ss:$16 sps:$4 sm:$0xff]   ;;  %v2598_v10 = vld [vmem:[#allocation7 + $0x1a4] ss:$16 sps:$4 sm:$0xff]   ;;  %v643_v17 = vadd.s32 640, %v3061_v3 }
  0x57   :  { %1748 = vmatpush1.bf16.msra.mxu1 %v2567_v44  ;;  %1706 = vmatprep.subr.bf16.mxu0 %v2568_v47  ;;  %v2600_v11 = vld [vmem:[#allocation7 + $0x3a4] ss:$16 sps:$4 sm:$0xff]   ;;  %v2602_v13 = vld [vmem:[#allocation7 + $0x1a0] ss:$16 sps:$4 sm:$0xff]  }
  0x58   :  { %1749 = vmatprep.subr.bf16.mxu1 %v2570_v48  ;;  %v2603_v15 = vld [vmem:[#allocation7 + $0x3a0] ss:$16 sps:$4 sm:$0xff]   ;;  %v2604_v16 = vld [vmem:[#allocation7 + $0x184] ss:$16 sps:$4 sm:$0xff]   ;;  %v3725_v48 = vmov 0 }
  0x59   :  { %2479 = vset.pattern.permute.xlu0 %v2977_v26  ;;  %v2608_v19 = vld [vmem:[#allocation7 + $0x180] ss:$16 sps:$4 sm:$0xff]   ;;  %v2610_v21 = vld [vmem:[#allocation7 + $0x164] ss:$16 sps:$4 sm:$0xff]  }
  0x5a   :  { %520 = vperm.xlu0 %2479, %v515_v24   ;;  %456 = vperm.xlu1 %2475, %v451_v25   ;;  %v2609_v20 = vld [vmem:[#allocation7 + $0x380] ss:$16 sps:$4 sm:$0xff]   ;;  %v2612_v2 = vld [vmem:[#allocation7 + $0x364] ss:$16 sps:$4 sm:$0xff]  }
  0x5b   :  { %1707 = vmatpush1.bf16.msra.mxu0 %v2572_v49  ;;  %1750 = vmatpush1.bf16.msra.mxu1 %v2573_v50  ;;  %v2614_v22 = vld [vmem:[#allocation7 + $0x160] ss:$16 sps:$4 sm:$0xff]   ;;  %v2616_v25 = vld [vmem:[#allocation7 + $0x144] ss:$16 sps:$4 sm:$0xff]   ;;  %v3727_v49 = vmov 0 }
  0x5c   :  { %1708 = vmatprep.subr.bf16.mxu0 %v2574_v52  ;;  %1751 = vmatprep.subr.bf16.mxu1 %v2576_v53  ;;  %v2615_v24 = vld [vmem:[#allocation7 + $0x360] ss:$16 sps:$4 sm:$0xff]   ;;  %v2624_v30 = vld [vmem:[#allocation7 + $0x324] ss:$16 sps:$4 sm:$0xff]  }
  0x5d   :  { %v2620_v27 = vld [vmem:[#allocation7 + $0x140] ss:$16 sps:$4 sm:$0xff]   ;;  %v2636_v36 = vld [vmem:[#allocation7 + $0x4e4] ss:$16 sps:$4 sm:$0xff]  }
  0x5e   :  { %2481 = vset.pattern.permute.xlu0 %v2978_v33  ;;  %2477 = vset.pattern.permute.xlu1 %v2975_v18  ;;  %v2606_v18 = vld [vmem:[#allocation7 + $0x384] ss:$16 sps:$4 sm:$0xff]   ;;  %v2621_v28 = vld [vmem:[#allocation7 + $0x340] ss:$16 sps:$4 sm:$0xff]  }
  0x5f   :  { %581 = vperm.xlu0 %2481, %v578_v29   ;;  %488 = vperm.xlu1 %2477, %v483_v32   ;;  %v2622_v29 = vld [vmem:[#allocation7 + $0x124] ss:$16 sps:$4 sm:$0xff]   ;;  %v2626_v31 = vld [vmem:[#allocation7 + $0x120] ss:$16 sps:$4 sm:$0xff]  }
  0x60   :  { %1709 = vmatpush1.bf16.msra.mxu0 %v2578_v56  ;;  %1752 = vmatpush1.bf16.msra.mxu1 %v2579_v57  ;;  %v2627_v3 = vld [vmem:[#allocation7 + $0x320] ss:$16 sps:$4 sm:$0xff]   ;;  %v2628_v32 = vld [vmem:[#allocation7 + $0x104] ss:$16 sps:$4 sm:$0xff]   ;;  %v3739_v57 = vmov 0 }
  0x61   :  { %1710 = vmatprep.subr.bf16.mxu0 %v2580_v58  ;;  %1753 = vmatprep.subr.bf16.mxu1 %v2582_v59  ;;  %v2632_v34 = vld [vmem:[#allocation7 + $0x100] ss:$16 sps:$4 sm:$0xff]   ;;  %v3741_v58 = vmov 0  ;;  %v2654_v52 = vld [vmem:[#allocation7 + $0x484] ss:$16 sps:$4 sm:$0xff]  }
  0x62   :  { %v2633_v35 = vld [vmem:[#allocation7 + $0x300] ss:$16 sps:$4 sm:$0xff]  }
  0x63   :  { %2484 = vset.pattern.permute.xlu0 %v2979_v42  ;;  %2478 = vset.pattern.permute.xlu1 %v2977_v26  ;;  %v2618_v26 = vld [vmem:[#allocation7 + $0x344] ss:$16 sps:$4 sm:$0xff]   ;;  %v2652_v53 = vld [vmem:[#allocation7 + $0x480] ss:$16 sps:$4 sm:$0xff]  }
  0x64   :  { %616 = vperm.xlu0 %2484, %v611_v38   ;;  %517 = vperm.xlu1 %2478, %v514_v39   ;;  %v300_v38 = vlaneseq }
  0x65   :  { %1711 = vmatpush1.bf16.msra.mxu0 %v2584_v61  ;;  %1754 = vmatpush1.bf16.msra.mxu1 %v2585_v62 }
  0x66   :  { %1712 = vmatprep.subr.bf16.mxu0 %v2586_v63  ;;  %1755 = vmatprep.subr.bf16.mxu1 %v2588_v0  ;;  %v3092_v39 = vand.u32 127, %v300_v38  ;;  %v3748_v0 = vmov 0  ;;  %v2664_v63 = vld [vmem:[#allocation7 + $0x440] ss:$16 sps:$4 sm:$0xff]  }
  0x68   :  { %2486 = vset.pattern.permute.xlu0 %v2980_v51  ;;  %2480 = vset.pattern.permute.xlu1 %v2981_v54  ;;  %v3095_v40 = vadd.s32 256, %v3092_v39  ;;  %v3103_v43 = vadd.s32 640, %v3092_v39  ;;  %v2660_v54 = vld [vmem:[#allocation7 + $0x464] ss:$16 sps:$4 sm:$0xff]  }
  0x69   :  { %677 = vperm.xlu0 %2486, %v674_v45   ;;  %549 = vperm.xlu1 %2480, %v546_v46   ;;  %v3723_v45 = vmov 0 }
  0x6a   :  { %1713 = vmatpush2.bf16.msra.mxu0 %v2590_v1  ;;  %1756 = vmatpush2.bf16.msra.mxu1 %v2591_v5  ;;  %v3750_v1 = vmov 0 }
  0x6b   :  { %1714 = vmatprep.subr.bf16.mxu0 %v2592_v6  ;;  %1757 = vmatprep.subr.bf16.mxu1 %v2594_v7  ;;  %v3753_v7 = vmov 0 }
  0x6d   :  { %552 = vperm.xlu1 %2480, %v547_v55  }
  0x6e   :  { %1715 = vmatpush2.bf16.msra.mxu0 %v2596_v8  ;;  %1758 = vmatpush2.bf16.msra.mxu1 %v2597_v9  ;;  %v3755_v8 = vmov 0 }
  0x6f   :  { %1716 = vmatprep.subr.bf16.mxu0 %v2598_v10  ;;  %1759 = vmatprep.subr.bf16.mxu1 %v2600_v11  ;;  %v2676_v10 = vld [vmem:[#allocation7 + $0x400] ss:$16 sps:$4 sm:$0xff]  }
  0x71   :  { %2482 = vset.pattern.permute.xlu1 %v2978_v33  ;;  %v2630_v33 = vld [vmem:[#allocation7 + $0x304] ss:$16 sps:$4 sm:$0xff]  }
  0x72   :  { %584 = vperm.xlu1 %2482, %v579_v60   ;;  %1717 = vmatpush2.bf16.msra.mxu0 %v2602_v13  ;;  %v3743_v60 = vmov 0  ;;  %v2661_v13 = vld [vmem:[#allocation7 + $0x68] ss:$16 sps:$4 sm:$0xff]  }
  0x73   :  { %1760 = vmatpush2.bf16.msra.mxu1 %v2603_v15  ;;  %1718 = vmatprep.subr.bf16.mxu0 %v2604_v16  ;;  %v3767_v15 = vmov 0 }
  0x74   :  { %1761 = vmatprep.subr.bf16.mxu1 %v2606_v18 }
  0x76   :  { %2483 = vset.pattern.permute.xlu1 %v2979_v42  ;;  %1719 = vmatpush2.bf16.msra.mxu0 %v2608_v19  ;;  %v3100_v42 = vadd.s32 512, %v3092_v39  ;;  %v3771_v19 = vmov 0 }
  0x77   :  { %613 = vperm.xlu1 %2483, %v610_v4   ;;  %1762 = vmatpush2.bf16.msra.mxu1 %v2609_v20  ;;  %v3248_v4 = vadd.s32 128, %v3092_v39  ;;  %v3359_v20 = vadd.s32 384, %v3092_v39 }
  0x78   :  { %1720 = vmatprep.subr.bf16.mxu0 %v2610_v21  ;;  %1763 = vmatprep.subr.bf16.mxu1 %v2612_v2 }
  0x7a   :  { %1721 = vmatpush2.bf16.msra.mxu0 %v2614_v22 }
  0x7b   :  { %2485 = vset.pattern.permute.xlu1 %v2982_v14  ;;  %1764 = vmatpush2.bf16.msra.mxu1 %v2615_v24  ;;  %v3764_v14 = vmov 0  ;;  %v2694_v24 = vld [vmem:[#allocation7 + $0x5a0] ss:$16 sps:$4 sm:$0xff]  }
  0x7c   :  { %645 = vperm.xlu1 %2485, %v642_v12   ;;  %1722 = vmatprep.subr.bf16.mxu0 %v2616_v25  ;;  %v2702_v25 = vld [vmem:[#allocation7 + $0x584] ss:$16 sps:$4 sm:$0xff]  }
  0x7d   :  { %1765 = vmatprep.subr.bf16.mxu1 %v2618_v26 }
  0x7e   :  { %1723 = vmatpush2.bf16.msra.mxu0 %v2620_v27 }
  0x7f   :  { %1766 = vmatpush2.bf16.msra.mxu1 %v2621_v28  ;;  %1724 = vmatprep.subr.bf16.mxu0 %v2622_v29  ;;  %v3777_v29 = vmov 0 }
  0x80   :  { %648 = vperm.xlu1 %2485, %v643_v17   ;;  %1767 = vmatprep.subr.bf16.mxu1 %v2624_v30  ;;  %v3769_v17 = vmov 0 }
  0x82   :  { %1725 = vmatpush2.bf16.msra.mxu0 %v2626_v31  ;;  %v2693_v31 = vld [vmem:[#allocation7 + $0x1cc] ss:$16 sps:$4 sm:$0xff]  }
  0x83   :  { %1768 = vmatpush2.bf16.msra.mxu1 %v2627_v3  ;;  %1726 = vmatprep.subr.bf16.mxu0 %v2628_v32  ;;  %v2983_v3 = vmov 0.0  }
  0x84   :  { %2487 = vset.pattern.permute.xlu1 %v2980_v51  ;;  %1769 = vmatprep.subr.bf16.mxu1 %v2630_v33 }
  0x85   :  { %680 = vperm.xlu1 %2487, %v675_v23  }
  0x86   :  { %1727 = vmatpush2.bf16.msra.mxu0 %v2632_v34 }
  0x87   :  { %1770 = vmatpush2.bf16.msra.mxu1 %v2633_v35  ;;  %1782 = vmatprep.subr.bf16.mxu0 %v2636_v36  ;;  %v3784_v35 = vmov 0  ;;  %v2712_v36 = vld [vmem:[#allocation7 + $0x540] ss:$16 sps:$4 sm:$0xff]  }
  0x88   :  { %1825 = vmatprep.subr.bf16.mxu1 %v2639_v37 }
  0xbd   :  { %v3097_v41 = vpop.permute.xlu0 %337 }
  0xbe   :  { %v3105_v44 = vpop.permute.xlu1 %357  ;;  %vm344_vm0 = vcmp.eq.s32.totalorder %v3095_v40, %v3097_v41  ;;  %vm346_vm2 = vcmp.eq.s32.totalorder %v3100_v42, %v3097_v41  ;;  %vm347_vm4 = vcmp.eq.s32.totalorder %v3103_v43, %v3097_v41  ;;  %vm342_vm11 = vcmp.eq.s32.totalorder %v3092_v39, %v3097_v41 }
  0xbf   :  { %vm364_vm1 = vcmp.eq.s32.totalorder %v3095_v40, %v3105_v44  ;;  %vm366_vm3 = vcmp.eq.s32.totalorder %v3100_v42, %v3105_v44  ;;  %vm367_vm5 = vcmp.eq.s32.totalorder %v3103_v43, %v3105_v44  ;;  %vm362_vm12 = vcmp.eq.s32.totalorder %v3092_v39, %v3105_v44 }
  0xc0   :  { %vm3119_vm6 = vmor %vm344_vm0, %vm364_vm1 }
  0xc1   :  { %v3724_v45 = vsel %vm3119_vm6, 4294967295, %v3723_v45  ;;  %v3123_v46 = vpop.permute.xlu0 %340  ;;  %vm3127_vm7 = vmor %vm346_vm2, %vm366_vm3 }
  0xc2   :  { %v3125_v47 = vpop.permute.xlu1 %360  ;;  %v3726_v48 = vsel %vm3127_vm7, 4294967295, %v3725_v48  ;;  %vm3131_vm8 = vmor %vm347_vm4, %vm367_vm5  ;;  %vm352_vm9 = vcmp.eq.s32.totalorder %v3100_v42, %v3123_v46  ;;  %vm353_vm13 = vcmp.eq.s32.totalorder %v3103_v43, %v3123_v46  ;;  %vm348_vm15 = vcmp.eq.s32.totalorder %v3092_v39, %v3123_v46 }
  0xc3   :  { %v3728_v49 = vsel %vm3131_vm8, 4294967295, %v3727_v49  ;;  %vm372_vm10 = vcmp.eq.s32.totalorder %v3100_v42, %v3125_v47  ;;  %vm373_vm14 = vcmp.eq.s32.totalorder %v3103_v43, %v3125_v47  ;;  %vm368_vm0 = vcmp.eq.s32.totalorder %v3092_v39, %v3125_v47  ;;  %vm3163_vm4 = vmor %vm342_vm11, %vm362_vm12 }
  0xc4   :  { %vm350_vm1 = vcmp.eq.s32.totalorder %v3095_v40, %v3123_v46  ;;  %vm370_vm2 = vcmp.eq.s32.totalorder %v3095_v40, %v3125_v47  ;;  %vm3159_vm3 = vmor %vm352_vm9, %vm372_vm10  ;;  %vm3735_vm11 = vnez %v3726_v48  ;;  %v2642_v48 = vld [vmem:[#allocation7 + $0x4c4] ss:$16 sps:$4 sm:$0xff]  }
  0xc5   :  { %vm3167_vm5 = vmor %vm353_vm13, %vm373_vm14  ;;  %vm3738_vm14 = vnez %v3728_v49  ;;  %v2640_v49 = vld [vmem:[#allocation7 + $0x4c0] ss:$16 sps:$4 sm:$0xff]  }
  0xc6   :  { %v3149_v51 = vpop.permute.xlu0 %389  ;;  %vm380_vm8 = vmor %vm348_vm15, %vm368_vm0 }
  0xc7   :  { %v3139_v50 = vpop.permute.xlu1 %392  ;;  %vm398_vm6 = vcmp.eq.s32.totalorder %v3100_v42, %v3149_v51  ;;  %vm399_vm7 = vcmp.eq.s32.totalorder %v3103_v43, %v3149_v51  ;;  %vm382_vm9 = vmor %vm350_vm1, %vm370_vm2 }
  0xc8   :  { %vm400_vm10 = vcmp.eq.s32.totalorder %v3092_v39, %v3139_v50  ;;  %vm3181_vm12 = vmor %vm3735_vm11, %vm398_vm6  ;;  %vm402_vm13 = vcmp.eq.s32.totalorder %v3095_v40, %v3139_v50  ;;  %vm404_vm0 = vcmp.eq.s32.totalorder %v3100_v42, %v3139_v50  ;;  %vm405_vm1 = vcmp.eq.s32.totalorder %v3103_v43, %v3139_v50 }
  0xc9   :  { %vm3189_vm15 = vmor %vm3738_vm14, %vm399_vm7  ;;  %vm394_vm6 = vcmp.eq.s32.totalorder %v3092_v39, %v3149_v51  ;;  %vm396_vm7 = vcmp.eq.s32.totalorder %v3095_v40, %v3149_v51 }
  0xca   :  { %v3740_v57 = vsel %vm3189_vm15, 4294967295, %v3739_v57  ;;  %vm3197_vm2 = vmor %vm380_vm8, %vm400_vm10 }
  0xcb   :  { %v3742_v58 = vsel %vm3197_vm2, 4294967295, %v3741_v58  ;;  %v3201_v59 = vpop.permute.xlu0 %424  ;;  %vm3205_vm11 = vmor %vm382_vm9, %vm402_vm13  ;;  %vm3745_vm2 = vnez %v3724_v45  ;;  %v2634_v45 = vld [vmem:[#allocation7 + $0x4e0] ss:$16 sps:$4 sm:$0xff]  }
  0xcc   :  { %v3175_v55 = vpop.permute.xlu1 %421  ;;  %v3744_v60 = vsel %vm3205_vm11, 4294967295, %v3743_v60  ;;  %vm416_vm8 = vmor %vm3159_vm3, %vm404_vm0  ;;  %vm436_vm14 = vcmp.eq.s32.totalorder %v3100_v42, %v3201_v59  ;;  %vm437_vm13 = vcmp.eq.s32.totalorder %v3103_v43, %v3201_v59 }
  0xcd   :  { %vm417_vm10 = vmor %vm3167_vm5, %vm405_vm1  ;;  %vm426_vm15 = vcmp.eq.s32.totalorder %v3092_v39, %v3175_v55  ;;  %vm428_vm5 = vcmp.eq.s32.totalorder %v3095_v40, %v3175_v55  ;;  %vm431_vm1 = vcmp.eq.s32.totalorder %v3103_v43, %v3175_v55 }
  0xce   :  { %vm406_vm9 = vmor %vm3163_vm4, %vm394_vm6  ;;  %vm430_vm4 = vcmp.eq.s32.totalorder %v3100_v42, %v3175_v55 }
  0xcf   :  { %vm408_vm11 = vmor %vm3745_vm2, %vm396_vm7 }
  0xd0   :  { %vm3229_vm3 = vmor %vm416_vm8, %vm436_vm14  ;;  %v3254_v5 = vpop.permute.xlu0 %485 }
  0xd1   :  { %v3209_v61 = vpop.permute.xlu1 %453  ;;  %vm3235_vm0 = vmor %vm417_vm10, %vm437_vm13  ;;  %vm3752_vm10 = vnez %v3740_v57 }
  0xd2   :  { %v3749_v0 = vsel %vm3235_vm0, 4294967295, %v3748_v0  ;;  %vm3243_vm2 = vmor %vm406_vm9, %vm426_vm15  ;;  %vm460_vm8 = vcmp.eq.s32.totalorder %v3095_v40, %v3209_v61  ;;  %vm462_vm14 = vcmp.eq.s32.totalorder %v3100_v42, %v3209_v61  ;;  %vm463_vm9 = vcmp.eq.s32.totalorder %v3103_v43, %v3209_v61 }
  0xd3   :  { %v3751_v1 = vsel %vm3243_vm2, 4294967295, %v3750_v1  ;;  %vm440_vm6 = vmor %vm408_vm11, %vm428_vm5  ;;  %vm343_vm11 = vcmp.eq.s32.totalorder %v3248_v4, %v3097_v41  ;;  %vm494_vm5 = vcmp.eq.s32.totalorder %v3100_v42, %v3254_v5  ;;  %vm369_vm2 = vcmp.eq.s32.totalorder %v3248_v4, %v3125_v47 }
  0xd4   :  { %vm442_vm7 = vmor %vm3181_vm12, %vm430_vm4  ;;  %vm363_vm12 = vcmp.eq.s32.totalorder %v3248_v4, %v3105_v44  ;;  %vm434_vm4 = vcmp.eq.s32.totalorder %v3095_v40, %v3201_v59 }
  0xd5   :  { %v3227_v62 = vpop.permute.xlu1 %456  ;;  %vm443_vm15 = vmor %vm3752_vm10, %vm431_vm1  ;;  %vm349_vm10 = vcmp.eq.s32.totalorder %v3248_v4, %v3123_v46  ;;  %v3298_v12 = vpop.permute.xlu0 %520 }
  0xd6   :  { %vm3268_vm13 = vmor %vm440_vm6, %vm460_vm8  ;;  %vm466_vm6 = vcmp.eq.s32.totalorder %v3095_v40, %v3227_v62 }
  0xd7   :  { %v3754_v7 = vsel %vm3268_vm13, 4294967295, %v3753_v7  ;;  %vm474_vm1 = vmor %vm442_vm7, %vm462_vm14  ;;  %vm468_vm14 = vcmp.eq.s32.totalorder %v3100_v42, %v3227_v62 }
  0xd8   :  { %vm3280_vm0 = vmor %vm443_vm15, %vm463_vm9  ;;  %vm3761_vm15 = vnez %v3744_v60  ;;  %v2666_v60 = vld [vmem:[#allocation7 + $0x444] ss:$16 sps:$4 sm:$0xff]  }
  0xd9   :  { %v3756_v8 = vsel %vm3280_vm0, 4294967295, %v3755_v8  ;;  %vm3288_vm8 = vmor %vm343_vm11, %vm363_vm12  ;;  %vm469_vm0 = vcmp.eq.s32.totalorder %v3103_v43, %v3227_v62 }
  0xda   :  { %v3256_v6 = vpop.permute.xlu1 %488  ;;  %vm3292_vm7 = vmor %vm474_vm1, %vm494_vm5  ;;  %vm3766_vm1 = vnez %v3749_v0  ;;  %v3363_v21 = vpop.permute.xlu0 %581  ;;  %v2672_v0 = vld [vmem:[#allocation7 + $0x424] ss:$16 sps:$4 sm:$0xff]  }
  0xdb   :  { %vm446_vm9 = vmor %vm3761_vm15, %vm434_vm4  ;;  %vm500_vm12 = vcmp.eq.s32.totalorder %v3100_v42, %v3256_v6  ;;  %vm532_vm4 = vcmp.eq.s32.totalorder %v3100_v42, %v3298_v12 }
  0xdc   :  { %vm3304_vm13 = vmor %vm349_vm10, %vm369_vm2 }
  0xdd   :  { %vm3308_vm11 = vmor %vm446_vm9, %vm466_vm6 }
  0xde   :  { %v3765_v14 = vsel %vm3308_vm11, 4294967295, %v3764_v14  ;;  %vm480_vm5 = vmor %vm3229_vm3, %vm468_vm14  ;;  %vm395_vm3 = vcmp.eq.s32.totalorder %v3248_v4, %v3149_v51 }
  0xdf   :  { %v3286_v9 = vpop.permute.xlu1 %517  ;;  %vm3320_vm15 = vmor %vm3766_vm1, %vm469_vm0  ;;  %vm401_vm0 = vcmp.eq.s32.totalorder %v3248_v4, %v3139_v50  ;;  %v3379_v22 = vpop.permute.xlu0 %616 }
  0xe0   :  { %v3768_v15 = vsel %vm3320_vm15, 4294967295, %v3767_v15  ;;  %vm526_vm2 = vcmp.eq.s32.totalorder %v3100_v42, %v3286_v9  ;;  %vm512_vm10 = vmor %vm480_vm5, %vm500_vm12  ;;  %vm427_vm12 = vcmp.eq.s32.totalorder %v3248_v4, %v3175_v55 }
  0xe1   :  { %vm544_vm14 = vmor %vm512_vm10, %vm532_vm4 }
  0xe2   :  { %vm538_vm9 = vmor %vm3292_vm7, %vm526_vm2  ;;  %vm433_vm7 = vcmp.eq.s32.totalorder %v3248_v4, %v3201_v59 }
  0xe3   :  { %vm407_vm4 = vmor %vm3288_vm8, %vm395_vm3  ;;  %vm465_vm8 = vcmp.eq.s32.totalorder %v3248_v4, %v3227_v62 }
  0xe4   :  { %v3326_v16 = vpop.permute.xlu1 %549  ;;  %vm413_vm10 = vmor %vm3304_vm13, %vm401_vm0  ;;  %vm497_vm13 = vcmp.eq.s32.totalorder %v3248_v4, %v3256_v6  ;;  %v3403_v26 = vpop.permute.xlu0 %677 }
  0xe5   :  { %vm558_vm6 = vcmp.eq.s32.totalorder %v3100_v42, %v3326_v16  ;;  %vm445_vm3 = vmor %vm413_vm10, %vm433_vm7  ;;  %vm529_vm7 = vcmp.eq.s32.totalorder %v3248_v4, %v3298_v12 }
  0xe6   :  { %vm3336_vm1 = vmor %vm538_vm9, %vm558_vm6  ;;  %vm459_vm6 = vcmp.eq.s32.totalorder %v3248_v4, %v3209_v61 }
  0xe7   :  { %v3770_v17 = vsel %vm3336_vm1, 4294967295, %v3769_v17  ;;  %vm439_vm9 = vmor %vm407_vm4, %vm427_vm12  ;;  %vm345_vm12 = vcmp.eq.s32.totalorder %v3359_v20, %v3097_v41  ;;  %vm365_vm4 = vcmp.eq.s32.totalorder %v3359_v20, %v3105_v44 }
  0xe8   :  { %v3340_v18 = vpop.permute.xlu1 %552  ;;  %vm477_vm0 = vmor %vm445_vm3, %vm465_vm8  ;;  %vm371_vm8 = vcmp.eq.s32.totalorder %v3359_v20, %v3125_v47 }
  0xe9   :  { %vm564_vm5 = vcmp.eq.s32.totalorder %v3100_v42, %v3340_v18  ;;  %vm509_vm10 = vmor %vm477_vm0, %vm497_vm13  ;;  %vm587_vm0 = vcmp.eq.s32.totalorder %v3248_v4, %v3363_v21 }
  0xea   :  { %vm3350_vm2 = vmor %vm544_vm14, %vm564_vm5  ;;  %vm491_vm14 = vcmp.eq.s32.totalorder %v3248_v4, %v3254_v5 }
  0xeb   :  { %v3772_v19 = vsel %vm3350_vm2, 4294967295, %v3771_v19  ;;  %vm471_vm5 = vmor %vm439_vm9, %vm459_vm6  ;;  %vm523_vm2 = vcmp.eq.s32.totalorder %v3248_v4, %v3286_v9  ;;  %vm555_vm6 = vcmp.eq.s32.totalorder %v3248_v4, %v3326_v16  ;;  %vm351_vm9 = vcmp.eq.s32.totalorder %v3359_v20, %v3123_v46 }
  0xec   :  { %vm503_vm1 = vmor %vm471_vm5, %vm491_vm14  ;;  %vm561_vm14 = vcmp.eq.s32.totalorder %v3248_v4, %v3340_v18 }
  0xed   :  { %v3365_v2 = vpop.permute.xlu1 %584  ;;  %vm535_vm3 = vmor %vm503_vm1, %vm523_vm2 }
  0xee   :  { %vm3391_vm5 = vmor %vm345_vm12, %vm365_vm4  ;;  %vm593_vm11 = vcmp.eq.s32.totalorder %v3248_v4, %v3365_v2 }
  0xef   :  { %vm541_vm13 = vmor %vm509_vm10, %vm529_vm7  ;;  %vm625_vm7 = vcmp.eq.s32.totalorder %v3248_v4, %v3379_v22 }
  0xf0   :  { %vm567_vm15 = vmor %vm535_vm3, %vm555_vm6  ;;  %vm397_vm3 = vcmp.eq.s32.totalorder %v3359_v20, %v3149_v51  ;;  %v2646_v51 = vld [vmem:[#allocation7 + $0x4a0] ss:$16 sps:$4 sm:$0xff]  }
  0xf1   :  { %vm3399_vm1 = vmor %vm351_vm9, %vm371_vm8  ;;  %vm683_vm8 = vcmp.eq.s32.totalorder %v3248_v4, %v3403_v26 }
  0xf2   :  { %v3387_v23 = vpop.permute.xlu1 %613  ;;  %vm573_vm2 = vmor %vm541_vm13, %vm561_vm14 }
  0xf3   :  { %vm619_vm12 = vcmp.eq.s32.totalorder %v3248_v4, %v3387_v23  ;;  %vm599_vm4 = vmor %vm567_vm15, %vm587_vm0  ;;  %vm403_vm15 = vcmp.eq.s32.totalorder %v3359_v20, %v3139_v50  ;;  %v2648_v50 = vld [vmem:[#allocation7 + $0x4a4] ss:$16 sps:$4 sm:$0xff]  }
  0xf4   :  { %vm605_vm10 = vmor %vm573_vm2, %vm593_vm11  ;;  %vm429_vm11 = vcmp.eq.s32.totalorder %v3359_v20, %v3175_v55 }
  0xf5   :  { %vm631_vm6 = vmor %vm599_vm4, %vm619_vm12  ;;  %vm435_vm4 = vcmp.eq.s32.totalorder %v3359_v20, %v3201_v59 }
  0xf6   :  { %vm637_vm14 = vmor %vm605_vm10, %vm625_vm7  ;;  %vm432_vm10 = vcmp.eq.s32.totalorder %v3092_v39, %v3201_v59  ;;  %v2658_v59 = vld [vmem:[#allocation7 + $0x460] ss:$16 sps:$4 sm:$0xff]  }
  0xf7   :  { %v3409_v27 = vpop.permute.xlu1 %645  ;;  %vm409_vm12 = vmor %vm3391_vm5, %vm397_vm3  ;;  %vm467_vm5 = vcmp.eq.s32.totalorder %v3359_v20, %v3227_v62  ;;  %vm3779_vm3 = vnez %v3742_v58  ;;  %v2645_v58 = vld [vmem:[#allocation7 + $0xcc] ss:$16 sps:$4 sm:$0xff]  }
  0xf8   :  { %vm651_vm9 = vcmp.eq.s32.totalorder %v3248_v4, %v3409_v27 }
  0xf9   :  { %vm663_vm13 = vmor %vm631_vm6, %vm651_vm9  ;;  %vm461_vm9 = vcmp.eq.s32.totalorder %v3359_v20, %v3209_v61 }
  0xfa   :  { %vm3421_vm0 = vmor %vm663_vm13, %vm683_vm8 }
  0xfb   :  { %v3419_v28 = vpop.permute.xlu1 %648  ;;  %v3778_v29 = vsel %vm3421_vm0, 4294967295, %v3777_v29  ;;  %vm415_vm6 = vmor %vm3399_vm1, %vm403_vm15  ;;  %vm493_vm15 = vcmp.eq.s32.totalorder %v3359_v20, %v3254_v5 }
  0xfc   :  { %vm657_vm2 = vcmp.eq.s32.totalorder %v3248_v4, %v3419_v28  ;;  %vm441_vm8 = vmor %vm409_vm12, %vm429_vm11  ;;  %vm3782_vm12 = vnez %v3778_v29  ;;  %v2708_v29 = vld [vmem:[#allocation7 + $0x564] ss:$16 sps:$4 sm:$0xff]  }
  0xfd   :  { %vm669_vm7 = vmor %vm637_vm14, %vm657_vm2  ;;  %vm499_vm2 = vcmp.eq.s32.totalorder %v3359_v20, %v3256_v6  ;;  %v2202_v32 = vsel %vm3782_vm12, 1.0, %v2983_v3 }
  0xfe   :  { %vm447_vm13 = vmor %vm415_vm6, %vm435_vm4  ;;  %vm458_vm6 = vcmp.eq.s32.totalorder %v3092_v39, %v3209_v61  ;;  %v2643_v61 = vld [vmem:[#allocation7 + $0xc8] ss:$16 sps:$4 sm:$0xff]  }
  0xff   :  { %vm3445_vm0 = vmor %vm3779_vm3, %vm432_vm10  ;;  %vm525_vm10 = vcmp.eq.s32.totalorder %v3359_v20, %v3286_v9  ;;  %vm557_vm3 = vcmp.eq.s32.totalorder %v3359_v20, %v3326_v16 }
 0x100   :  { %v3439_v30 = vpop.permute.xlu1 %680  ;;  %vm473_vm1 = vmor %vm441_vm8, %vm461_vm9  ;;  %vm531_vm9 = vcmp.eq.s32.totalorder %v3359_v20, %v3298_v12 }
 0x101   :  { %vm689_vm14 = vcmp.eq.s32.totalorder %v3248_v4, %v3439_v30  ;;  %vm479_vm4 = vmor %vm447_vm13, %vm467_vm5  ;;  %vm563_vm13 = vcmp.eq.s32.totalorder %v3359_v20, %v3340_v18  ;;  %vm3783_vm5 = vnez %v3751_v1  ;;  %v2649_v1 = vld [vmem:[#allocation7 + $0xa8] ss:$16 sps:$4 sm:$0xff]   ;;  %v2657_v4 = vld [vmem:[#allocation7 + $0x8c] ss:$16 sps:$4 sm:$0xff]  }
 0x102   :  { %vm701_vm11 = vmor %vm669_vm7, %vm689_vm14 }
 0x103   :  { %v2208_v33 = vsel %vm701_vm11, 1.0, %v2983_v3  ;;  %vm505_vm7 = vmor %vm473_vm1, %vm493_vm15  ;;  %vm464_vm1 = vcmp.eq.s32.totalorder %v3092_v39, %v3227_v62  ;;  %v2651_v62 = vld [vmem:[#allocation7 + $0xac] ss:$16 sps:$4 sm:$0xff]  }
 0x104   :  { %v3463_v34 = vpack.c.bf16 %v2208_v33, %v2202_v32  ;;  %vm511_vm8 = vmor %vm479_vm4, %vm499_vm2  ;;  %vm589_vm2 = vcmp.eq.s32.totalorder %v3359_v20, %v3363_v21  ;;  %vm595_vm4 = vcmp.eq.s32.totalorder %v3359_v20, %v3365_v2  ;;  %v2706_v32 = vld [vmem:[#allocation7 + $0x560] ss:$16 sps:$4 sm:$0xff]   ;;  %v2714_v33 = vld [vmem:[#allocation7 + $0x544] ss:$16 sps:$4 sm:$0xff]  }
 0x105   :  { %vm537_vm14 = vmor %vm505_vm7, %vm525_vm10  ;;  %vm621_vm7 = vcmp.eq.s32.totalorder %v3359_v20, %v3387_v23 }
 0x106   :  { %1728 = vmatprep.mubr.bf16.mxu0 %v3463_v34  ;;  %vm3474_vm11 = vmor %vm3783_vm5, %vm458_vm6 }
 0x107   :  { %v3785_v35 = vsel %vm3474_vm11, 4294967295, %v3784_v35  ;;  %vm543_vm15 = vmor %vm511_vm8, %vm531_vm9  ;;  %vm627_vm9 = vcmp.eq.s32.totalorder %v3359_v20, %v3379_v22  ;;  %vm685_vm11 = vcmp.eq.s32.totalorder %v3359_v20, %v3403_v26 }
 0x108   :  { %vm569_vm12 = vmor %vm537_vm14, %vm557_vm3  ;;  %vm653_vm3 = vcmp.eq.s32.totalorder %v3359_v20, %v3409_v27 }
 0x109   :  { %vm575_vm10 = vmor %vm543_vm15, %vm563_vm13  ;;  %vm659_vm13 = vcmp.eq.s32.totalorder %v3359_v20, %v3419_v28 }
 0x10a   :  { %vm3488_vm6 = vmor %vm3445_vm0, %vm464_vm1  ;;  %vm691_vm1 = vcmp.eq.s32.totalorder %v3359_v20, %v3439_v30 }
 0x10b   :  { %vm601_vm5 = vmor %vm569_vm12, %vm589_vm2  ;;  %vm490_vm2 = vcmp.eq.s32.totalorder %v3092_v39, %v3254_v5 }
 0x10c   :  { %vm607_vm8 = vmor %vm575_vm10, %vm595_vm4  ;;  %vm496_vm4 = vcmp.eq.s32.totalorder %v3092_v39, %v3256_v6 }
 0x10d   :  { %vm633_vm14 = vmor %vm601_vm5, %vm621_vm7  ;;  %vm522_vm7 = vcmp.eq.s32.totalorder %v3092_v39, %v3286_v9 }
 0x10e   :  { %vm639_vm15 = vmor %vm607_vm8, %vm627_vm9  ;;  %vm528_vm9 = vcmp.eq.s32.totalorder %v3092_v39, %v3298_v12  ;;  %vm3788_vm8 = vnez %v3785_v35  ;;  %v2699_v35 = vld [vmem:[#allocation7 + $0x1ac] ss:$16 sps:$4 sm:$0xff]  }
 0x10f   :  { %vm665_vm0 = vmor %vm633_vm14, %vm653_vm3 }
 0x110   :  { %vm671_vm12 = vmor %vm639_vm15, %vm659_vm13  ;;  %vm560_vm15 = vcmp.eq.s32.totalorder %v3092_v39, %v3340_v18 }
 0x111   :  { %vm697_vm10 = vmor %vm665_vm0, %vm685_vm11  ;;  %vm554_vm11 = vcmp.eq.s32.totalorder %v3092_v39, %v3326_v16 }
 0x112   :  { %vm703_vm5 = vmor %vm671_vm12, %vm691_vm1  ;;  %v2204_v37 = vsel %vm697_vm10, 1.0, %v2983_v3  ;;  %vm586_vm1 = vcmp.eq.s32.totalorder %v3092_v39, %v3363_v21 }
 0x113   :  { %v2210_v41 = vsel %vm703_vm5, 1.0, %v2983_v3  ;;  %vm502_vm3 = vmor %vm3788_vm8, %vm490_vm2  ;;  %vm592_vm2 = vcmp.eq.s32.totalorder %v3092_v39, %v3365_v2  ;;  %vm650_vm8 = vcmp.eq.s32.totalorder %v3092_v39, %v3409_v27 }
 0x114   :  { %v3514_v44 = vpack.c.bf16 %v2210_v41, %v2204_v37  ;;  %vm508_vm14 = vmor %vm3488_vm6, %vm496_vm4  ;;  %vm618_vm6 = vcmp.eq.s32.totalorder %v3092_v39, %v3387_v23  ;;  %v2720_v37 = vld [vmem:[#allocation7 + $0x524] ss:$16 sps:$4 sm:$0xff]   ;;  %v2697_v41 = vld [vmem:[#allocation7 + $0x1a8] ss:$16 sps:$4 sm:$0xff]  }
 0x115   :  { %vm534_vm13 = vmor %vm502_vm3, %vm522_vm7  ;;  %vm624_vm7 = vcmp.eq.s32.totalorder %v3092_v39, %v3379_v22  ;;  %vm656_vm3 = vcmp.eq.s32.totalorder %v3092_v39, %v3419_v28 }
 0x116   :  { %1771 = vmatprep.mubr.bf16.mxu1 %v3514_v44  ;;  %vm540_vm0 = vmor %vm508_vm14, %vm528_vm9 }
 0x117   :  { %vm566_vm12 = vmor %vm534_vm13, %vm554_vm11  ;;  %vm682_vm11 = vcmp.eq.s32.totalorder %v3092_v39, %v3403_v26 }
 0x118   :  { %vm572_vm10 = vmor %vm540_vm0, %vm560_vm15  ;;  %vm688_vm15 = vcmp.eq.s32.totalorder %v3092_v39, %v3439_v30  ;;  %vm492_vm0 = vcmp.eq.s32.totalorder %v3095_v40, %v3254_v5 }
 0x119   :  { %vm598_vm4 = vmor %vm566_vm12, %vm586_vm1  ;;  %vm498_vm12 = vcmp.eq.s32.totalorder %v3095_v40, %v3256_v6 }
 0x11a   :  { %vm604_vm5 = vmor %vm572_vm10, %vm592_vm2  ;;  %vm524_vm10 = vcmp.eq.s32.totalorder %v3095_v40, %v3286_v9 }
 0x11b   :  { %vm630_vm9 = vmor %vm598_vm4, %vm618_vm6  ;;  %vm530_vm4 = vcmp.eq.s32.totalorder %v3095_v40, %v3298_v12 }
 0x11c   :  { %vm636_vm14 = vmor %vm604_vm5, %vm624_vm7  ;;  %vm3789_vm7 = vnez %v3754_v7  ;;  %v2655_v7 = vld [vmem:[#allocation7 + $0x88] ss:$16 sps:$4 sm:$0xff]  }
 0x11d   :  { %vm662_vm13 = vmor %vm630_vm9, %vm650_vm8  ;;  %vm3790_vm8 = vnez %v3765_v14  ;;  %v2669_v14 = vld [vmem:[#allocation7 + $0x4c] ss:$16 sps:$4 sm:$0xff]  }
 0x11e   :  { %vm668_vm1 = vmor %vm636_vm14, %vm656_vm3  ;;  %vm556_vm3 = vcmp.eq.s32.totalorder %v3095_v40, %v3326_v16 }
 0x11f   :  { %vm694_vm2 = vmor %vm662_vm13, %vm682_vm11  ;;  %vm562_vm11 = vcmp.eq.s32.totalorder %v3095_v40, %v3340_v18 }
 0x120   :  { %vm700_vm6 = vmor %vm668_vm1, %vm688_vm15  ;;  %v2201_v46 = vsel %vm694_vm2, 1.0, %v2983_v3  ;;  %vm588_vm15 = vcmp.eq.s32.totalorder %v3095_v40, %v3363_v21  ;;  %vm594_vm1 = vcmp.eq.s32.totalorder %v3095_v40, %v3365_v2  ;;  %vm620_vm2 = vcmp.eq.s32.totalorder %v3095_v40, %v3387_v23 }
 0x121   :  { %v2207_v39 = vsel %vm700_vm6, 1.0, %v2983_v3  ;;  %vm504_vm5 = vmor %vm3789_vm7, %vm492_vm0  ;;  %vm626_vm6 = vcmp.eq.s32.totalorder %v3095_v40, %v3379_v22  ;;  %vm652_vm7 = vcmp.eq.s32.totalorder %v3095_v40, %v3409_v27 }
 0x122   :  { %v3551_v47 = vpack.c.bf16 %v2207_v39, %v2201_v46  ;;  %vm510_vm9 = vmor %vm3790_vm8, %vm498_vm12  ;;  %vm658_vm8 = vcmp.eq.s32.totalorder %v3095_v40, %v3419_v28  ;;  %v2718_v46 = vld [vmem:[#allocation7 + $0x520] ss:$16 sps:$4 sm:$0xff]   ;;  %v2726_v39 = vld [vmem:[#allocation7 + $0x504] ss:$16 sps:$4 sm:$0xff]  }
 0x123   :  { %vm536_vm14 = vmor %vm504_vm5, %vm524_vm10 }
 0x124   :  { %1729 = vmatmul.mubr.bf16.vlgmr.msra.gmra.mxu0 %v3551_v47  ;;  %vm542_vm13 = vmor %vm510_vm9, %vm530_vm4 }
 0x125   :  { %vm568_vm0 = vmor %vm536_vm14, %vm556_vm3  ;;  %1783 = vmatpush1.bf16.msra.mxu0 %v2634_v45  ;;  %vm684_vm3 = vcmp.eq.s32.totalorder %v3095_v40, %v3403_v26  ;;  %v2705_v45 = vld [vmem:[#allocation7 + $0x18c] ss:$16 sps:$4 sm:$0xff]  }
 0x126   :  { %vm574_vm12 = vmor %vm542_vm13, %vm562_vm11  ;;  %1784 = vmatprep.subr.bf16.mxu0 %v2642_v48  ;;  %vm690_vm11 = vcmp.eq.s32.totalorder %v3095_v40, %v3439_v30  ;;  %vm495_vm13 = vcmp.eq.s32.totalorder %v3103_v43, %v3254_v5  ;;  %v2637_v40 = vld [vmem:[#allocation7 + $0xe8] ss:$16 sps:$4 sm:$0xff]   ;;  %v2670_v5 = vld [vmem:[#allocation7 + $0x420] ss:$16 sps:$4 sm:$0xff]  }
 0x127   :  { %vm600_vm10 = vmor %vm568_vm0, %vm588_vm15  ;;  %vm501_vm0 = vcmp.eq.s32.totalorder %v3103_v43, %v3256_v6  ;;  %v2678_v6 = vld [vmem:[#allocation7 + $0x404] ss:$16 sps:$4 sm:$0xff]   ;;  %v2703_v48 = vld [vmem:[#allocation7 + $0x188] ss:$16 sps:$4 sm:$0xff]  }
 0x128   :  { %vm606_vm4 = vmor %vm574_vm12, %vm594_vm1  ;;  %vm527_vm12 = vcmp.eq.s32.totalorder %v3103_v43, %v3286_v9 }
 0x129   :  { %vm632_vm5 = vmor %vm600_vm10, %vm620_vm2  ;;  %1785 = vmatpush1.bf16.msra.mxu0 %v2640_v49  ;;  %vm533_vm10 = vcmp.eq.s32.totalorder %v3103_v43, %v3298_v12  ;;  %v2684_v12 = vld [vmem:[#allocation7 + $0x5e4] ss:$16 sps:$4 sm:$0xff]   ;;  %v2711_v49 = vld [vmem:[#allocation7 + $0x16c] ss:$16 sps:$4 sm:$0xff]  }
 0x12a   :  { %vm638_vm9 = vmor %vm606_vm4, %vm626_vm6  ;;  %1786 = vmatprep.subr.bf16.mxu0 %v2648_v50  ;;  %vm3791_vm6 = vnez %v3756_v8  ;;  %v2724_v50 = vld [vmem:[#allocation7 + $0x500] ss:$16 sps:$4 sm:$0xff]  }
 0x12b   :  { %vm664_vm14 = vmor %vm632_vm5, %vm652_vm7  ;;  %vm3792_vm7 = vnez %v3768_v15  ;;  %v2682_v15 = vld [vmem:[#allocation7 + $0x5e0] ss:$16 sps:$4 sm:$0xff]  }
 0x12c   :  { %vm670_vm15 = vmor %vm638_vm9, %vm658_vm8  ;;  %vm559_vm8 = vcmp.eq.s32.totalorder %v3103_v43, %v3326_v16  ;;  %v2690_v16 = vld [vmem:[#allocation7 + $0x5c4] ss:$16 sps:$4 sm:$0xff]  }
 0x12d   :  { %vm696_vm1 = vmor %vm664_vm14, %vm684_vm3  ;;  %1787 = vmatpush1.bf16.msra.mxu0 %v2646_v51  ;;  %vm565_vm3 = vcmp.eq.s32.totalorder %v3103_v43, %v3340_v18  ;;  %v2675_v18 = vld [vmem:[#allocation7 + $0x2c] ss:$16 sps:$4 sm:$0xff]  }
 0x12e   :  { %vm702_vm2 = vmor %vm670_vm15, %vm690_vm11  ;;  %1788 = vmatprep.subr.bf16.mxu0 %v2654_v52  ;;  %v2203_v55 = vsel %vm696_vm1, 1.0, %v2983_v3  ;;  %vm591_vm11 = vcmp.eq.s32.totalorder %v3103_v43, %v3363_v21  ;;  %vm597_vm15 = vcmp.eq.s32.totalorder %v3103_v43, %v3365_v2  ;;  %vm623_vm1 = vcmp.eq.s32.totalorder %v3103_v43, %v3387_v23  ;;  %v2732_v51 = vld [vmem:[#allocation7 + $0x2ec] ss:$16 sps:$4 sm:$0xff]   ;;  %v2709_v52 = vld [vmem:[#allocation7 + $0x168] ss:$16 sps:$4 sm:$0xff]  }
 0x12f   :  { %v2209_v56 = vsel %vm702_vm2, 1.0, %v2983_v3  ;;  %vm507_vm4 = vmor %vm3791_vm6, %vm495_vm13  ;;  %vm629_vm2 = vcmp.eq.s32.totalorder %v3103_v43, %v3379_v22  ;;  %vm655_vm6 = vcmp.eq.s32.totalorder %v3103_v43, %v3409_v27 }
 0x130   :  { %v3588_v57 = vpack.c.bf16 %v2209_v56, %v2203_v55  ;;  %vm513_vm5 = vmor %vm3792_vm7, %vm501_vm0  ;;  %vm661_vm7 = vcmp.eq.s32.totalorder %v3103_v43, %v3419_v28  ;;  %v2715_v55 = vld [vmem:[#allocation7 + $0x148] ss:$16 sps:$4 sm:$0xff]   ;;  %v2723_v56 = vld [vmem:[#allocation7 + $0x12c] ss:$16 sps:$4 sm:$0xff]  }
 0x131   :  { %vm539_vm9 = vmor %vm507_vm4, %vm527_vm12  ;;  %1789 = vmatpush1.bf16.msra.mxu0 %v2652_v53  ;;  %v2717_v53 = vld [vmem:[#allocation7 + $0x14c] ss:$16 sps:$4 sm:$0xff]  }
 0x132   :  { %1772 = vmatmul.mubr.bf16.vlgmr.msra.gmra.mxu1 %v3588_v57  ;;  %vm545_vm14 = vmor %vm513_vm5, %vm533_vm10  ;;  %1790 = vmatprep.subr.bf16.mxu0 %v2660_v54  ;;  %v2730_v54 = vld [vmem:[#allocation7 + $0x2e8] ss:$16 sps:$4 sm:$0xff]  }
 0x133   :  { %1826 = vmatpush1.bf16.msra.mxu1 %v2637_v40  ;;  %vm571_vm13 = vmor %vm539_vm9, %vm559_vm8  ;;  %1857 = vmatprep.mubr.bf16.mxu1 %v3463_v34  ;;  %vm687_vm8 = vcmp.eq.s32.totalorder %v3103_v43, %v3403_v26  ;;  %v2691_v34 = vld [vmem:[#allocation7 + $0x1c8] ss:$16 sps:$4 sm:$0xff]   ;;  %v2738_v40 = vld [vmem:[#allocation7 + $0x2cc] ss:$16 sps:$4 sm:$0xff]  }
 0x134   :  { %vm577_vm0 = vmor %vm545_vm14, %vm565_vm3  ;;  %1827 = vmatprep.subr.bf16.mxu1 %v2645_v58  ;;  %vm693_vm3 = vcmp.eq.s32.totalorder %v3103_v43, %v3439_v30  ;;  %vm590_vm14 = vcmp.eq.s32.totalorder %v3100_v42, %v3363_v21  ;;  %v2663_v43 = vld [vmem:[#allocation7 + $0x6c] ss:$16 sps:$4 sm:$0xff]   ;;  %v2736_v58 = vld [vmem:[#allocation7 + $0x2c8] ss:$16 sps:$4 sm:$0xff]  }
 0x135   :  { %vm603_vm12 = vmor %vm571_vm13, %vm591_vm11  ;;  %1791 = vmatpush1.bf16.msra.mxu0 %v2658_v59  ;;  %vm596_vm13 = vcmp.eq.s32.totalorder %v3100_v42, %v3365_v2  ;;  %v2696_v2 = vld [vmem:[#allocation7 + $0x5a4] ss:$16 sps:$4 sm:$0xff]   ;;  %v2744_v59 = vld [vmem:[#allocation7 + $0x2ac] ss:$16 sps:$4 sm:$0xff]  }
 0x136   :  { %vm609_vm10 = vmor %vm577_vm0, %vm597_vm15  ;;  %1792 = vmatprep.subr.bf16.mxu0 %v2666_v60  ;;  %vm622_vm0 = vcmp.eq.s32.totalorder %v3100_v42, %v3387_v23  ;;  %v2681_v23 = vld [vmem:[#allocation7 + $0xc] ss:$16 sps:$4 sm:$0xff]   ;;  %v2721_v60 = vld [vmem:[#allocation7 + $0x128] ss:$16 sps:$4 sm:$0xff]  }
 0x137   :  { %vm635_vm4 = vmor %vm603_vm12, %vm623_vm1  ;;  %1828 = vmatpush1.bf16.msra.mxu1 %v2643_v61  ;;  %vm628_vm12 = vcmp.eq.s32.totalorder %v3100_v42, %v3379_v22  ;;  %v2729_v61 = vld [vmem:[#allocation7 + $0x10c] ss:$16 sps:$4 sm:$0xff]  }
 0x138   :  { %vm641_vm5 = vmor %vm609_vm10, %vm629_vm2  ;;  %1829 = vmatprep.subr.bf16.mxu1 %v2651_v62  ;;  %vm3793_vm2 = vnez %v3770_v17  ;;  %v2667_v17 = vld [vmem:[#allocation7 + $0x48] ss:$16 sps:$4 sm:$0xff]  }
 0x139   :  { %vm667_vm9 = vmor %vm635_vm4, %vm655_vm6  ;;  %1793 = vmatpush1.bf16.msra.mxu0 %v2664_v63  ;;  %vm3794_vm6 = vnez %v3772_v19  ;;  %v2688_v19 = vld [vmem:[#allocation7 + $0x5c0] ss:$16 sps:$4 sm:$0xff]   ;;  %v2742_v62 = vld [vmem:[#allocation7 + $0x2a8] ss:$16 sps:$4 sm:$0xff]  }
 0x13a   :  { %vm673_vm11 = vmor %vm641_vm5, %vm661_vm7  ;;  %1794 = vmatprep.subr.bf16.mxu0 %v2672_v0  ;;  %vm654_vm7 = vcmp.eq.s32.totalorder %v3100_v42, %v3409_v27  ;;  %v2687_v27 = vld [vmem:[#allocation7 + $0x1ec] ss:$16 sps:$4 sm:$0xff]   ;;  %v2727_v0 = vld [vmem:[#allocation7 + $0x108] ss:$16 sps:$4 sm:$0xff]  }
 0x13b   :  { %vm699_vm15 = vmor %vm667_vm9, %vm687_vm8  ;;  %1830 = vmatpush1.bf16.msra.mxu1 %v2649_v1  ;;  %vm660_vm8 = vcmp.eq.s32.totalorder %v3100_v42, %v3419_v28  ;;  %v2700_v28 = vld [vmem:[#allocation7 + $0x580] ss:$16 sps:$4 sm:$0xff]   ;;  %v2750_v63 = vld [vmem:[#allocation7 + $0x28c] ss:$16 sps:$4 sm:$0xff]  }
 0x13c   :  { %vm705_vm1 = vmor %vm673_vm11, %vm693_vm3  ;;  %1831 = vmatprep.subr.bf16.mxu1 %v2657_v4  ;;  %v2206_v8 = vsel %vm699_vm15, 1.0, %v2983_v3  ;;  %vm686_vm3 = vcmp.eq.s32.totalorder %v3100_v42, %v3403_v26  ;;  %vm692_vm11 = vcmp.eq.s32.totalorder %v3100_v42, %v3439_v30  ;;  %v2673_v42 = vld [vmem:[#allocation7 + $0x28] ss:$16 sps:$4 sm:$0xff]   ;;  %v2735_v1 = vld [vmem:[#allocation7 + $0x4ec] ss:$16 sps:$4 sm:$0xff]  }
 0x13d   :  { %v2212_v9 = vsel %vm705_vm1, 1.0, %v2983_v3  ;;  %1795 = vmatpush1.bf16.msra.mxu0 %v2670_v5  ;;  %vm602_vm10 = vmor %vm3793_vm2, %vm590_vm14  ;;  %v2679_v26 = vld [vmem:[#allocation7 + $0x8] ss:$16 sps:$4 sm:$0xff]   ;;  %v2756_v5 = vld [vmem:[#allocation7 + $0x26c] ss:$16 sps:$4 sm:$0xff]   ;;  %vm2988_vm1 = vmmov 0  }
 0x13e   :  { %v3629_v11 = vpack.c.bf16 %v2212_v9, %v2206_v8  ;;  %1796 = vmatprep.subr.bf16.mxu0 %v2678_v6  ;;  %vm608_vm4 = vmor %vm3794_vm6, %vm596_vm13  ;;  %v2685_v30 = vld [vmem:[#allocation7 + $0x1e8] ss:$16 sps:$4 sm:$0xff]   ;;  %v2741_v6 = vld [vmem:[#allocation7 + $0x4cc] ss:$16 sps:$4 sm:$0xff]   ;;  %vm2015_vm2 = vcmask 130048  }
 0x13f   :  { %1832 = vmatpush1.bf16.msra.mxu1 %v2655_v7  ;;  %vm634_vm5 = vmor %vm602_vm10, %vm622_vm0  ;;  %v2748_v4 = vld [vmem:[#allocation7 + $0x288] ss:$16 sps:$4 sm:$0xff]   ;;  %v2747_v9 = vld [vmem:[#allocation7 + $0x4ac] ss:$16 sps:$4 sm:$0xff]   ;;  %vm2071_vm10 = vcmask 392192  }
 0x140   :  { %1814 = vmatprep.mubr.bf16.mxu0 %v3629_v11  ;;  %1833 = vmatprep.subr.bf16.mxu1 %v2663_v43  ;;  %vm640_vm9 = vmor %vm608_vm4, %vm628_vm12  ;;  %v2754_v7 = vld [vmem:[#allocation7 + $0x268] ss:$16 sps:$4 sm:$0xff]   ;;  %v2762_v43 = vld [vmem:[#allocation7 + $0x24c] ss:$16 sps:$4 sm:$0xff]   ;;  %vm1982_vm12 = vcmask 261120  }
 0x141   :  { %1797 = vmatpush1.bf16.msra.mxu0 %v2676_v10  ;;  %vm666_vm14 = vmor %vm634_vm5, %vm654_vm7  ;;  %v2739_v8 = vld [vmem:[#allocation7 + $0x4c8] ss:$16 sps:$4 sm:$0xff]  }
 0x142   :  { %1798 = vmatprep.subr.bf16.mxu0 %v2684_v12  ;;  %vm672_vm13 = vmor %vm640_vm9, %vm660_vm8  ;;  %v2760_v10 = vld [vmem:[#allocation7 + $0x248] ss:$16 sps:$4 sm:$0xff]   ;;  %v2768_v12 = vld [vmem:[#allocation7 + $0x22c] ss:$16 sps:$4 sm:$0xff]  }
 0x143   :  { %1834 = vmatpush1.bf16.msra.mxu1 %v2661_v13  ;;  %vm698_vm15 = vmor %vm666_vm14, %vm686_vm3  ;;  %v2745_v13 = vld [vmem:[#allocation7 + $0x4a8] ss:$16 sps:$4 sm:$0xff]  }
 0x144   :  { %1835 = vmatprep.subr.bf16.mxu1 %v2669_v14  ;;  %vm704_vm0 = vmor %vm672_vm13, %vm692_vm11  ;;  %v2205_v20 = vsel %vm698_vm15, 1.0, %v2983_v3  ;;  %v2753_v14 = vld [vmem:[#allocation7 + $0x48c] ss:$16 sps:$4 sm:$0xff]  }
 0x145   :  { %1799 = vmatpush2.bf16.msra.mxu0 %v2682_v15  ;;  %v2211_v21 = vsel %vm704_vm0, 1.0, %v2983_v3  ;;  %v2766_v15 = vld [vmem:[#allocation7 + $0x228] ss:$16 sps:$4 sm:$0xff]  }
 0x146   :  { %1800 = vmatprep.subr.bf16.mxu0 %v2690_v16  ;;  %v3653_v22 = vpack.c.bf16 %v2211_v21, %v2205_v20  ;;  %v2751_v16 = vld [vmem:[#allocation7 + $0x488] ss:$16 sps:$4 sm:$0xff]   ;;  %v2765_v20 = vld [vmem:[#allocation7 + $0x44c] ss:$16 sps:$4 sm:$0xff]  }
 0x147   :  { %1836 = vmatpush1.bf16.msra.mxu1 %v2667_v17  ;;  %v2759_v17 = vld [vmem:[#allocation7 + $0x46c] ss:$16 sps:$4 sm:$0xff]   ;;  %v2778_v21 = vld [vmem:[#allocation7 + $0x3e8] ss:$16 sps:$4 sm:$0xff]  }
 0x148   :  { %1837 = vmatprep.subr.bf16.mxu1 %v2675_v18  ;;  %v2780_v18 = vld [vmem:[#allocation7 + $0x3ec] ss:$16 sps:$4 sm:$0xff]  }
 0x149   :  { %1801 = vmatpush2.bf16.msra.mxu0 %v2688_v19  ;;  %v2757_v19 = vld [vmem:[#allocation7 + $0x468] ss:$16 sps:$4 sm:$0xff]  }
 0x14a   :  { %1802 = vmatprep.subr.bf16.mxu0 %v2696_v2  ;;  %v2786_v2 = vld [vmem:[#allocation7 + $0x3cc] ss:$16 sps:$4 sm:$0xff]  }
 0x14b   :  { %1838 = vmatpush1.bf16.msra.mxu1 %v2673_v42  ;;  %v2763_v42 = vld [vmem:[#allocation7 + $0x448] ss:$16 sps:$4 sm:$0xff]  }
 0x14c   :  { %1839 = vmatprep.subr.bf16.mxu1 %v2681_v23  ;;  %v2771_v23 = vld [vmem:[#allocation7 + $0x42c] ss:$16 sps:$4 sm:$0xff]  }
 0x14d   :  { %1803 = vmatpush2.bf16.msra.mxu0 %v2694_v24  ;;  %v2784_v24 = vld [vmem:[#allocation7 + $0x3c8] ss:$16 sps:$4 sm:$0xff]  }
 0x14e   :  { %1804 = vmatprep.subr.bf16.mxu0 %v2702_v25  ;;  %v2792_v25 = vld [vmem:[#allocation7 + $0x3ac] ss:$16 sps:$4 sm:$0xff]  }
 0x14f   :  { %1840 = vmatpush1.bf16.msra.mxu1 %v2679_v26  ;;  %v2769_v26 = vld [vmem:[#allocation7 + $0x428] ss:$16 sps:$4 sm:$0xff]  }
 0x150   :  { %1841 = vmatprep.subr.bf16.mxu1 %v2687_v27  ;;  %v2777_v27 = vld [vmem:[#allocation7 + $0x40c] ss:$16 sps:$4 sm:$0xff]  }
 0x151   :  { %1805 = vmatpush2.bf16.msra.mxu0 %v2700_v28  ;;  %v2790_v28 = vld [vmem:[#allocation7 + $0x3a8] ss:$16 sps:$4 sm:$0xff]  }
 0x152   :  { %1806 = vmatprep.subr.bf16.mxu0 %v2708_v29  ;;  %v2798_v29 = vld [vmem:[#allocation7 + $0x38c] ss:$16 sps:$4 sm:$0xff]  }
 0x153   :  { %1842 = vmatpush2.bf16.msra.mxu1 %v2685_v30  ;;  %v2775_v30 = vld [vmem:[#allocation7 + $0x408] ss:$16 sps:$4 sm:$0xff]  }
 0x154   :  { %1843 = vmatprep.subr.bf16.mxu1 %v2693_v31  ;;  %v2783_v31 = vld [vmem:[#allocation7 + $0x5ec] ss:$16 sps:$4 sm:$0xff]  }
 0x155   :  { %1807 = vmatpush2.bf16.msra.mxu0 %v2706_v32  ;;  %v2796_v32 = vld [vmem:[#allocation7 + $0x388] ss:$16 sps:$4 sm:$0xff]  }
 0x156   :  { %1808 = vmatprep.subr.bf16.mxu0 %v2714_v33  ;;  %v2804_v33 = vld [vmem:[#allocation7 + $0x36c] ss:$16 sps:$4 sm:$0xff]  }
 0x157   :  { %1844 = vmatpush2.bf16.msra.mxu1 %v2691_v34  ;;  %v2781_v34 = vld [vmem:[#allocation7 + $0x5e8] ss:$16 sps:$4 sm:$0xff]  }
 0x158   :  { %1845 = vmatprep.subr.bf16.mxu1 %v2699_v35  ;;  %v2789_v35 = vld [vmem:[#allocation7 + $0x5cc] ss:$16 sps:$4 sm:$0xff]  }
 0x159   :  { %1809 = vmatpush2.bf16.msra.mxu0 %v2712_v36  ;;  %v2802_v36 = vld [vmem:[#allocation7 + $0x368] ss:$16 sps:$4 sm:$0xff]  }
 0x15a   :  { %1810 = vmatprep.subr.bf16.mxu0 %v2720_v37  ;;  %v2810_v37 = vld [vmem:[#allocation7 + $0x34c] ss:$16 sps:$4 sm:$0xff]  }
 0x15b   :  { %1846 = vmatpush2.bf16.msra.mxu1 %v2697_v41  ;;  %v2787_v41 = vld [vmem:[#allocation7 + $0x5c8] ss:$16 sps:$4 sm:$0xff]  }
 0x15c   :  { %1847 = vmatprep.subr.bf16.mxu1 %v2705_v45  ;;  %v2795_v45 = vld [vmem:[#allocation7 + $0x5ac] ss:$16 sps:$4 sm:$0xff]  }
 0x15d   :  { %1811 = vmatpush2.bf16.msra.mxu0 %v2718_v46  ;;  %v2808_v46 = vld [vmem:[#allocation7 + $0x348] ss:$16 sps:$4 sm:$0xff]  }
 0x15e   :  { %1812 = vmatprep.subr.bf16.mxu0 %v2726_v39  ;;  %v2816_v39 = vld [vmem:[#allocation7 + $0x32c] ss:$16 sps:$4 sm:$0xff]  }
 0x15f   :  { %1848 = vmatpush2.bf16.msra.mxu1 %v2703_v48  ;;  %v2793_v48 = vld [vmem:[#allocation7 + $0x5a8] ss:$16 sps:$4 sm:$0xff]  }
 0x160   :  { %1849 = vmatprep.subr.bf16.mxu1 %v2711_v49  ;;  %v2801_v49 = vld [vmem:[#allocation7 + $0x58c] ss:$16 sps:$4 sm:$0xff]  }
 0x161   :  { %1813 = vmatpush2.bf16.msra.mxu0 %v2724_v50  ;;  %v2814_v50 = vld [vmem:[#allocation7 + $0x328] ss:$16 sps:$4 sm:$0xff]  }
 0x162   :  { %1868 = vmatprep.subr.bf16.mxu0 %v2732_v51  ;;  %v2822_v51 = vld [vmem:[#allocation7 + $0x30c] ss:$16 sps:$4 sm:$0xff]  }
 0x163   :  { %1850 = vmatpush2.bf16.msra.mxu1 %v2709_v52  ;;  %v2799_v52 = vld [vmem:[#allocation7 + $0x588] ss:$16 sps:$4 sm:$0xff]  }
 0x164   :  { %1851 = vmatprep.subr.bf16.mxu1 %v2717_v53  ;;  %1815 = vmatmul.mubr.bf16.vlgmr.msra.gmra.mxu0 %v3653_v22  ;;  %v2807_v53 = vld [vmem:[#allocation7 + $0x56c] ss:$16 sps:$4 sm:$0xff]  }
 0x165   :  { %1869 = vmatpush1.bf16.msra.mxu0 %v2730_v54  ;;  %1900 = vmatprep.mubr.bf16.mxu0 %v3514_v44  ;;  %v2733_v44 = vld [vmem:[#allocation7 + $0x4e8] ss:$16 sps:$4 sm:$0xff]  }
 0x166   :  { %1870 = vmatprep.subr.bf16.mxu0 %v2738_v40  ;;  %v2820_v54 = vld [vmem:[#allocation7 + $0x308] ss:$16 sps:$4 sm:$0xff]  }
 0x167   :  { %1852 = vmatpush2.bf16.msra.mxu1 %v2715_v55  ;;  %v2805_v40 = vld [vmem:[#allocation7 + $0x568] ss:$16 sps:$4 sm:$0xff]   ;;  %v2813_v55 = vld [vmem:[#allocation7 + $0x54c] ss:$16 sps:$4 sm:$0xff]  }
 0x168   :  { %1853 = vmatprep.subr.bf16.mxu1 %v2723_v56  ;;  %v2811_v56 = vld [vmem:[#allocation7 + $0x548] ss:$16 sps:$4 sm:$0xff]  }
 0x169   :  { %1871 = vmatpush1.bf16.msra.mxu0 %v2736_v58  ;;  %v2819_v58 = vld [vmem:[#allocation7 + $0x52c] ss:$16 sps:$4 sm:$0xff]  }
 0x16a   :  { %1872 = vmatprep.subr.bf16.mxu0 %v2744_v59  ;;  %v2817_v59 = vld [vmem:[#allocation7 + $0x528] ss:$16 sps:$4 sm:$0xff]  }
 0x16b   :  { %1854 = vmatpush2.bf16.msra.mxu1 %v2721_v60  ;;  %v2825_v60 = vld [vmem:[#allocation7 + $0x50c] ss:$16 sps:$4 sm:$0xff]  }
 0x16c   :  { %1855 = vmatprep.subr.bf16.mxu1 %v2729_v61  ;;  %v2823_v61 = vld [vmem:[#allocation7 + $0x508] ss:$16 sps:$4 sm:$0xff]  }
 0x16d   :  { %1873 = vmatpush1.bf16.msra.mxu0 %v2742_v62  ;;  %v301_v62 = vshrl.u32 %v300_v38, 7 }
 0x16e   :  { %1874 = vmatprep.subr.bf16.mxu0 %v2750_v63 }
 0x16f   :  { %1856 = vmatpush2.bf16.msra.mxu1 %v2727_v0  ;;  %v302_v0 = vsub.s32 0, %v301_v62 }
 0x170   :  { %1911 = vmatprep.subr.bf16.mxu1 %v2735_v1  ;;  %v306_v1 = vsub.s32 1, %v301_v62 }
 0x171   :  { %1875 = vmatpush1.bf16.msra.mxu0 %v2748_v4 }
 0x172   :  { %1858 = vmatmul.mubr.bf16.vlgmr.msra.gmra.mxu1 %v3551_v47  ;;  %1876 = vmatprep.subr.bf16.mxu0 %v2756_v5  ;;  %v2774_v47 = vld [vmem:[#allocation7 + $0x20c] ss:$16 sps:$4 sm:$0xff]  }
 0x173   :  { %1912 = vmatpush1.bf16.msra.mxu1 %v2733_v44  ;;  %1943 = vmatprep.mubr.bf16.mxu1 %v3629_v11  ;;  %v2772_v11 = vld [vmem:[#allocation7 + $0x208] ss:$16 sps:$4 sm:$0xff]  }
 0x174   :  { %1913 = vmatprep.subr.bf16.mxu1 %v2741_v6 }
 0x175   :  { %1877 = vmatpush1.bf16.msra.mxu0 %v2754_v7 }
 0x176   :  { %1878 = vmatprep.subr.bf16.mxu0 %v2762_v43 }
 0x177   :  { %1914 = vmatpush1.bf16.msra.mxu1 %v2739_v8 }
 0x178   :  { %1915 = vmatprep.subr.bf16.mxu1 %v2747_v9 }
 0x179   :  { %1879 = vmatpush1.bf16.msra.mxu0 %v2760_v10 }
 0x17a   :  { %1880 = vmatprep.subr.bf16.mxu0 %v2768_v12 }
 0x17b   :  { %1916 = vmatpush1.bf16.msra.mxu1 %v2745_v13 }
 0x17c   :  { %1917 = vmatprep.subr.bf16.mxu1 %v2753_v14 }
 0x17d   :  { %1881 = vmatpush1.bf16.msra.mxu0 %v2766_v15 }
 0x17e   :  { %1882 = vmatprep.subr.bf16.mxu0 %v2774_v47 }
 0x17f   :  { %1918 = vmatpush1.bf16.msra.mxu1 %v2751_v16 }
 0x180   :  { %1919 = vmatprep.subr.bf16.mxu1 %v2759_v17 }
 0x181   :  { %1883 = vmatpush1.bf16.msra.mxu0 %v2772_v11 }
 0x182   :  { %1884 = vmatprep.subr.bf16.mxu0 %v2780_v18 }
 0x183   :  { %1920 = vmatpush1.bf16.msra.mxu1 %v2757_v19 }
 0x184   :  { %1921 = vmatprep.subr.bf16.mxu1 %v2765_v20 }
 0x185   :  { %1885 = vmatpush2.bf16.msra.mxu0 %v2778_v21 }
 0x186   :  { %1886 = vmatprep.subr.bf16.mxu0 %v2786_v2 }
 0x187   :  { %1922 = vmatpush1.bf16.msra.mxu1 %v2763_v42 }
 0x188   :  { %1923 = vmatprep.subr.bf16.mxu1 %v2771_v23 }
 0x189   :  { %1887 = vmatpush2.bf16.msra.mxu0 %v2784_v24 }
 0x18a   :  { %1888 = vmatprep.subr.bf16.mxu0 %v2792_v25 }
 0x18b   :  { %1924 = vmatpush1.bf16.msra.mxu1 %v2769_v26 }
 0x18c   :  { %1925 = vmatprep.subr.bf16.mxu1 %v2777_v27 }
 0x18d   :  { %1889 = vmatpush2.bf16.msra.mxu0 %v2790_v28 }
 0x18e   :  { %1890 = vmatprep.subr.bf16.mxu0 %v2798_v29 }
 0x18f   :  { %1926 = vmatpush1.bf16.msra.mxu1 %v2775_v30 }
 0x190   :  { %1927 = vmatprep.subr.bf16.mxu1 %v2783_v31 }
 0x191   :  { %1891 = vmatpush2.bf16.msra.mxu0 %v2796_v32  ;;  %v310_v32 = vsub.s32 2, %v301_v62 }
 0x192   :  { %1892 = vmatprep.subr.bf16.mxu0 %v2804_v33 }
 0x193   :  { %1928 = vmatpush2.bf16.msra.mxu1 %v2781_v34 }
 0x194   :  { %1929 = vmatprep.subr.bf16.mxu1 %v2789_v35 }
 0x195   :  { %1893 = vmatpush2.bf16.msra.mxu0 %v2802_v36 }
 0x196   :  { %1894 = vmatprep.subr.bf16.mxu0 %v2810_v37  ;;  %v314_v37 = vsub.s32 3, %v301_v62 }
 0x197   :  { %1930 = vmatpush2.bf16.msra.mxu1 %v2787_v41 }
 0x198   :  { %1931 = vmatprep.subr.bf16.mxu1 %v2795_v45 }
 0x199   :  { %1895 = vmatpush2.bf16.msra.mxu0 %v2808_v46 }
 0x19a   :  { %1896 = vmatprep.subr.bf16.mxu0 %v2816_v39 }
 0x19b   :  { %1932 = vmatpush2.bf16.msra.mxu1 %v2793_v48 }
 0x19c   :  { %1933 = vmatprep.subr.bf16.mxu1 %v2801_v49 }
 0x19d   :  { %1897 = vmatpush2.bf16.msra.mxu0 %v2814_v50 }
 0x19e   :  { %1898 = vmatprep.subr.bf16.mxu0 %v2822_v51 }
 0x19f   :  { %1934 = vmatpush2.bf16.msra.mxu1 %v2799_v52 }
 0x1a0   :  { %1935 = vmatprep.subr.bf16.mxu1 %v2807_v53 }
 0x1a1   :  { %1899 = vmatpush2.bf16.msra.mxu0 %v2820_v54 }
 0x1a2   :  { %2420 = vmatprep.subr.bf16.mxu0 %v2983_v3 }
 0x1a3   :  { %1936 = vmatpush2.bf16.msra.mxu1 %v2805_v40 }
 0x1a4   :  { %1937 = vmatprep.subr.bf16.mxu1 %v2813_v55  ;;  %1901 = vmatmul.mubr.bf16.vlgmr.msra.gmra.mxu0 %v3588_v57  ;;  %v298_v57 = vld [vmem:[%s3718_s3] sm:$0xf]  ;;  %s2984_s3 = smov 32  }
 0x1a5   :  { %v303_v5 = vrot.slane %v298_v57, %v302_v0  ;;  %v307_v6 = vrot.slane %v298_v57, %v306_v1  ;;  %v311_v35 = vrot.slane %v298_v57, %v310_v32  ;;  %v315_v39 = vrot.slane %v298_v57, %v314_v37  ;;  %2426 = vmatprep.mubr.msk.bf16.mxu0 %vm2988_vm1, %v2983_v3 }
 0x1a7   :  { %1938 = vmatpush2.bf16.msra.mxu1 %v2811_v56 }
 0x1a8   :  { %1939 = vmatprep.subr.bf16.mxu1 %v2819_v58 }
 0x1ab   :  { %1940 = vmatpush2.bf16.msra.mxu1 %v2817_v59 }
 0x1ac   :  { %1941 = vmatprep.subr.bf16.mxu1 %v2825_v60 }
 0x1af   :  { %1942 = vmatpush2.bf16.msra.mxu1 %v2823_v61  ;;  %v2826_v61 = vld [vmem:[#allocation8 + $0x8] sm:$0xff]  }
 0x1b0   :  { %2430 = vmatprep.subr.bf16.mxu1 %v2983_v3 }
 0x1b2   :  { %1944 = vmatmul.mubr.bf16.vlgmr.msra.gmra.mxu1 %v3653_v22 }
 0x1b3   :  { %2431 = vmatpush3.bf16.msra.mxu1 %v2826_v61  ;;  %2434 = vmatprep.mubr.msk.bf16.mxu1 %vm2988_vm1, %v2983_v3 }
 0x1b4   :  { %2432 = vmatprep.subr.bf16.mxu1 %v2983_v3 }
 0x1e4   :  { %v1730_v63 = vpop.f32.mrf.mxu0 }
 0x1e5   :  { %v1731_v43 = vadd.f32 %v1730_v63, %v303_v5 }
 0x1e6   :  { %v1732_v4 = vpop.f32.mrf.mxu0 }
 0x1e7   :  { %v1733_v9 = vadd.f32 %v1732_v4, %v307_v6 }
 0x1e8   :  { %v1734_v7 = vpop.f32.mrf.mxu0 }
 0x1e9   :  { %v1735_v22 = vadd.f32 %v1734_v7, %v303_v5 }
 0x1ea   :  { %v1736_v10 = vpop.f32.mrf.mxu0 }
 0x1eb   :  { %v1737_v15 = vadd.f32 %v1736_v10, %v307_v6  ;;  %v2830_v10 = vld [vmem:[#allocation5] sm:$0xff]  }
 0x1f2   :  { %v1773_v44 = vpop.f32.mrf.mxu1 }
 0x1f3   :  { %v1774_v12 = vadd.f32 %v1773_v44, %v1731_v43 }
 0x1f4   :  { %v1775_v8 = vpop.f32.mrf.mxu1 }
 0x1f5   :  { %v1776_v14 = vadd.f32 %v1775_v8, %v1733_v9  ;;  %v2827_v8 = vld [vmem:[#allocation10 + $0x10] sm:$0xff]  }
 0x1f6   :  { %v1777_v13 = vpop.f32.mrf.mxu1  ;;  %v2828_v9 = vld [vmem:[#allocation8] sm:$0xff]   ;;  %2421 = vmatpush3.bf16.msra.mxu0 %v2827_v8 }
 0x1f7   :  { %v1778_v17 = vadd.f32 %v1777_v13, %v1735_v22  ;;  %2433 = vmatpush3.bf16.msra.mxu1 %v2828_v9  ;;  %v2829_v22 = vld [vmem:[#allocation10 + $0x8] sm:$0xff]   ;;  %2422 = vmatprep.subr.bf16.mxu0 %v2983_v3  ;;  %v2831_v13 = vld [vmem:[#allocation10] sm:$0xff]  }
 0x1f8   :  { %v1779_v18 = vpop.f32.mrf.mxu1 }
 0x1f9   :  { %v1780_v20 = vadd.f32 %v1779_v18, %v1737_v15 }
 0x1fa   :  { %2435 = vmatmul.mubr.msk.bf16.vlgmr.msra.gmra.mxu1 %vm1982_vm12, %v2830_v10  ;;  %2423 = vmatpush3.bf16.msra.mxu0 %v2829_v22 }
 0x1fb   :  { %2424 = vmatprep.subr.bf16.mxu0 %v2983_v3 }
 0x1fe   :  { %2425 = vmatpush3.bf16.msra.mxu0 %v2831_v13 }
 0x224   :  { %v1816_v38 = vpop.f32.mrf.mxu0 }
 0x225   :  { %v1817_v47 = vadd.f32 %v1816_v38, %v1774_v12 }
 0x226   :  { %v1818_v16 = vpop.f32.mrf.mxu0 }
 0x227   :  { %v1819_v11 = vadd.f32 %v1818_v16, %v1776_v14  ;;  %v3667_v21 = vmax.f32 %v1817_v47, 0.0 }
 0x228   :  { %v1820_v19 = vpop.f32.mrf.mxu0 }
 0x229   :  { %v1955_v2 = vmax.f32 %v1819_v11, 0.0  ;;  %v1821_v42 = vadd.f32 %v1820_v19, %v1778_v17 }
 0x22a   :  { %v1822_v23 = vpop.f32.mrf.mxu0 }
 0x22b   :  { %v3669_v24 = vmax.f32 %v1821_v42, 0.0  ;;  %v1823_v25 = vadd.f32 %v1822_v23, %v1780_v20  ;;  %v2488_v26 = vpack.i.bf16 %v1955_v2, %v3667_v21 }
 0x22d   :  { %v1959_v27 = vmax.f32 %v1823_v25, 0.0  ;;  %2489 = vrot.lane.b32.xlu0 %v2488_v26, %s2984_s3  ;;  %v2493_v28 = vpack.i.bf16 %v3669_v24, %v3667_v21 }
 0x22f   :  { %2494 = vrot.lane.b32.xlu1 %v2493_v28, %s2985_s28  ;;  %v2503_v29 = vpack.i.bf16 %v1959_v27, %v1955_v2  ;;  %v2498_v30 = vpack.i.bf16 %v1959_v27, %v3669_v24 }
 0x231   :  { %2504 = vrot.lane.b32.xlu0 %v2503_v29, %s2986_s8 }
 0x232   :  { %v1859_v31 = vpop.f32.mrf.mxu1 }
 0x233   :  { %2499 = vrot.lane.b32.xlu1 %v2498_v30, %s2984_s3  ;;  %v1860_v45 = vadd.f32 %v1859_v31, %v311_v35 }
 0x234   :  { %v1861_v34 = vpop.f32.mrf.mxu1 }
 0x235   :  { %v1862_v53 = vadd.f32 %v1861_v34, %v315_v39 }
 0x236   :  { %v1863_v41 = vpop.f32.mrf.mxu1 }
 0x237   :  { %2509 = vrot.lane.b32.xlu1 %v2503_v29, %s2961_s27  ;;  %v1864_v50 = vadd.f32 %v1863_v41, %v311_v35  ;;  %s2987_s27 = smov 96  }
 0x238   :  { %v1865_v49 = vpop.f32.mrf.mxu1 }
 0x239   :  { %v1866_v54 = vadd.f32 %v1865_v49, %v315_v39 }
 0x264   :  { %v1902_v33 = vpop.f32.mrf.mxu0 }
 0x265   :  { %v1903_v48 = vadd.f32 %v1902_v33, %v1860_v45 }
 0x266   :  { %v1904_v36 = vpop.f32.mrf.mxu0 }
 0x267   :  { %v1905_v59 = vadd.f32 %v1904_v36, %v1862_v53 }
 0x268   :  { %v1906_v46 = vpop.f32.mrf.mxu0 }
 0x269   :  { %v1907_v55 = vadd.f32 %v1906_v46, %v1864_v50 }
 0x26a   :  { %v1908_v52 = vpop.f32.mrf.mxu0 }
 0x26b   :  { %v1909_v60 = vadd.f32 %v1908_v52, %v1866_v54 }
 0x272   :  { %v1945_v51 = vpop.f32.mrf.mxu1 }
 0x273   :  { %v1946_v40 = vadd.f32 %v1945_v51, %v1903_v48 }
 0x274   :  { %v1947_v56 = vpop.f32.mrf.mxu1 }
 0x275   :  { %v1956_v58 = vmax.f32 %v1946_v40, 0.0  ;;  %v3678_v57 = vadd.f32 %v1947_v56, %v1905_v59 }
 0x276   :  { %v1949_v63 = vpop.f32.mrf.mxu1 }
 0x277   :  { %v1950_v62 = vadd.f32 %v1949_v63, %v1907_v55  ;;  %v2513_v0 = vpack.i.bf16 %v1956_v58, %v1955_v2  ;;  %v1957_v43 = vmax.f32 %v3678_v57, 0.0 }
 0x278   :  { %v1951_v1 = vpop.f32.mrf.mxu1 }
 0x279   :  { %v1960_v4 = vmax.f32 %v1950_v62, 0.0  ;;  %v3680_v5 = vadd.f32 %v1951_v1, %v1909_v60  ;;  %2514 = vrot.lane.b32.xlu0 %v2513_v0, %s2969_s22 }
 0x27b   :  { %v1961_v44 = vmax.f32 %v3680_v5, 0.0  ;;  %v2518_v6 = vpack.i.bf16 %v1960_v4, %v1959_v27  ;;  %v2523_v7 = vpack.i.bf16 %v1960_v4, %v1956_v58 }
 0x27d   :  { %2519 = vrot.lane.b32.xlu1 %v2518_v6, %s2969_s22  ;;  %2524 = vrot.lane.b32.xlu0 %v2523_v7, %s2987_s27  ;;  %v2533_v12 = vpack.i.bf16 %v1961_v44, %v1957_v43 }
 0x281   :  { %2529 = vrot.lane.b32.xlu1 %v2523_v7, %s2989_s9  ;;  %2534 = vrot.lane.b32.xlu0 %v2533_v12, %s2985_s28  ;;  %v2200_v12 = vld [vmem:[%s3721_s6] ss:$0 sm:$0xff] }
 0x29f   :  { %v2490_v15 = vpop.permute.xlu0 %2489 }
 0x2a0   :  { %v2492_v11 = vunpack.i.h.bf16 %v2490_v15  ;;  %v2491_v18 = vunpack.i.l.bf16 %v2490_v15 }
 0x2a1   :  { %v2495_v38 = vpop.permute.xlu1 %2494 }
 0x2a2   :  { %v2496_v47 = vunpack.i.l.bf16 %v2495_v38  ;;  %v2497_v19 = vunpack.i.h.bf16 %v2495_v38  ;;  %v1983_v25 = vsel %vm1982_vm12, %v2491_v18, %v2492_v11 }
 0x2a3   :  { %v2505_v23 = vpop.permute.xlu0 %2504 }
 0x2a4   :  { %v1970_v20 = vmax.f32 %v3667_v21, %v2496_v47  ;;  %v1971_v42 = vmax.f32 %v3669_v24, %v2497_v19  ;;  %v2506_v28 = vunpack.i.l.bf16 %v2505_v23  ;;  %v2507_v30 = vunpack.i.h.bf16 %v2505_v23 }
 0x2a5   :  { %v2500_v14 = vpop.permute.xlu1 %2499 }
 0x2a6   :  { %v2502_v16 = vunpack.i.h.bf16 %v2500_v14  ;;  %v2501_v17 = vunpack.i.l.bf16 %v2500_v14  ;;  %v1987_v26 = vmax.f32 %v1970_v20, %v1983_v25 }
 0x2a8   :  { %v1984_v2 = vsel %vm1982_vm12, %v2501_v17, %v2502_v16  ;;  %v1995_v32 = vmax.f32 %v1987_v26, %v2506_v28 }
 0x2a9   :  { %v2510_v3 = vpop.permute.xlu1 %2509  ;;  %v1988_v27 = vmax.f32 %v1971_v42, %v1984_v2 }
 0x2aa   :  { %v2511_v29 = vunpack.i.l.bf16 %v2510_v3  ;;  %v2512_v35 = vunpack.i.h.bf16 %v2510_v3 }
 0x2ab   :  { %v1996_v21 = vmax.f32 %v1988_v27, %v2507_v30 }
 0x2ac   :  { %v2003_v36 = vmax.f32 %v1995_v32, %v2511_v29 }
 0x2ad   :  { %v2004_v49 = vmax.f32 %v1996_v21, %v2512_v35 }
 0x2ba   :  { %v2170_v7 = vpop.f32.mrf.mxu1 }
 0x2bc   :  { %v2436_v8 = vpop.f32.mrf.mxu1 }
 0x2be   :  { %v2173_v9 = vpop.f32.mrf.mxu1 }
 0x2c0   :  { %v2437_v10 = vpop.f32.mrf.mxu1 }
 0x2eb   :  { %v2515_v31 = vpop.permute.xlu0 %2514 }
 0x2ec   :  { %v2517_v33 = vunpack.i.h.bf16 %v2515_v31  ;;  %v2516_v34 = vunpack.i.l.bf16 %v2515_v31 }
 0x2ee   :  { %v2016_v37 = vsel %vm2015_vm2, %v2516_v34, %v2517_v33 }
 0x2ef   :  { %v2520_v24 = vpop.permute.xlu1 %2519  ;;  %v2525_v41 = vpop.permute.xlu0 %2524  ;;  %v2020_v48 = vmax.f32 %v2003_v36, %v2016_v37 }
 0x2f0   :  { %v2522_v45 = vunpack.i.h.bf16 %v2520_v24  ;;  %v2521_v46 = vunpack.i.l.bf16 %v2520_v24  ;;  %v2526_v39 = vunpack.i.l.bf16 %v2525_v41  ;;  %v2527_v51 = vunpack.i.h.bf16 %v2525_v41 }
 0x2f2   :  { %v2017_v50 = vsel %vm2015_vm2, %v2521_v46, %v2522_v45  ;;  %v2028_v54 = vmax.f32 %v2020_v48, %v2526_v39 }
 0x2f3   :  { %v2021_v52 = vmax.f32 %v2004_v49, %v2017_v50  ;;  %v2530_v53 = vpop.permute.xlu1 %2529  ;;  %v2535_v58 = vpop.permute.xlu0 %2534 }
 0x2f4   :  { %v2532_v40 = vunpack.i.h.bf16 %v2530_v53  ;;  %v2531_v55 = vunpack.i.l.bf16 %v2530_v53  ;;  %v2536_v61 = vunpack.i.l.bf16 %v2535_v58  ;;  %v2537_v62 = vunpack.i.h.bf16 %v2535_v58 }
 0x2f5   :  { %v2029_v56 = vmax.f32 %v2021_v52, %v2527_v51 }
 0x2f6   :  { %v2036_v59 = vmax.f32 %v2028_v54, %v2531_v55 }
 0x2f7   :  { %v2037_v60 = vmax.f32 %v2029_v56, %v2532_v40 }
 0x2f8   :  { %v2038_v63 = vmax.f32 %v2036_v59, %v1957_v43 }
 0x2f9   :  { %v2039_v0 = vmax.f32 %v2037_v60, %v1961_v44 }
 0x2fa   :  { %v2048_v1 = vmax.f32 %v2038_v63, %v2536_v61 }
 0x2fb   :  { %v2049_v4 = vmax.f32 %v2039_v0, %v2537_v62 }
 0x2fd   :  { %v2052_v6 = vpack.c.bf16 %v2049_v4, %v2048_v1 }
 0x2ff   :  { %2427 = vmatmul.mubr.msk.bf16.vlgmr.msra.gmra.mxu0 %vm2071_vm10, %v2052_v6 }
 0x3bf   :  { %v2109_v22 = vpop.f32.mrf.mxu0 }
 0x3c0   :  { %v2171_v57 = vadd.f32 %v2170_v7, %v2109_v22 }
 0x3c1   :  { %v2428_v43 = vpop.f32.mrf.mxu0 }
 0x3c2   :  { %v2177_v13 = vadd.f32 %v2200_v12, %v2171_v57 }
 0x3c3   :  { %v2112_v38 = vpop.f32.mrf.mxu0 }
 0x3c4   :  { %2179 = vst [vmem:[#allocation11] sm:$0xff] %v2177_v13  ;;  %v2174_v5 = vadd.f32 %v2173_v9, %v2112_v38 }
 0x3c5   :  { %v2429_v44 = vpop.f32.mrf.mxu0 }
 0x3c6   :  { %v2178_v14 = vadd.f32 %v2200_v12, %v2174_v5 }
 0x3c8   :  { %2180 = vst [vmem:[#allocation11 + $0x8] sm:$0xff] %v2178_v14 }
 0x3c9   :  { %2943 = shalt.err (!%p2940_p1)
}
 0x3ca   :  { %2192 = dma.vmem_to_hbm [thread:$0]  %s2187_s13, 256, %s3722_s7, [#allocation4], %s2965_s15, %s2965_s15, %s2966_s16  }
 0x3cb   :  { %2958 = dma.done.wait [#allocation4], 256  }
 0x3cc   :  { %2959 = vsyncadd [#allocation4], 4294967040 }
 0x3cd   :  { %2196 = vsyncpa [#allocation3], 1 }
 0x3ce   :  { %2197 = vsyncpa [#allocation6], 1 }
 0x3cf   :  { %2198 = vsyncpa [#allocation9], 1 }
 0x3d0   :  { %2199 = vsyncpa [#allocation4], 1 }

</bundles_post_ra>
